<compile_context>
chip_gen: v7x
topology: tpu7x:2x2x1
jax: 0.10.0
libtpu: 0.0.40
codegen_flags: <defaults>
</compile_context>

<pallas_src>
import math

import numpy as np
import jax
import jax.numpy as jnp
from jax.experimental import pallas as pl
from jax.experimental.pallas import tpu as pltpu


def _round_up(x, m):
    return (x + m - 1) // m * m


# ----------------------------------------------------------------------------
# Pallas kernel: full MLP for one tile of rows.
# ----------------------------------------------------------------------------
def _visibility_kernel(x_ref, w0_ref, wmid_ref, w4_ref, b_ref, o_ref):
    bf16 = jnp.bfloat16
    f32 = jnp.float32

    # (8, 128) f32: rows 0..3 = b0..b3, row 4 lanes 0..7 = padded b4.
    b = b_ref[...]

    # Layer 0: (tm, 84) x (84, 128).  K=84 is unaligned; Mosaic pads it in VMEM.
    h = jnp.dot(x_ref[...].astype(bf16), w0_ref[...], preferred_element_type=f32)
    h = jnp.maximum(h + b[0:1, :], 0.0)

    # Layers 1..3: (tm, 128) x (128, 128), weights stacked in one (3,128,128) slab.
    h = jnp.dot(h.astype(bf16), wmid_ref[0], preferred_element_type=f32)
    h = jnp.maximum(h + b[1:2, :], 0.0)
    h = jnp.dot(h.astype(bf16), wmid_ref[1], preferred_element_type=f32)
    h = jnp.maximum(h + b[2:3, :], 0.0)
    h = jnp.dot(h.astype(bf16), wmid_ref[2], preferred_element_type=f32)
    h = jnp.maximum(h + b[3:4, :], 0.0)

    # Visibility head: (tm, 128) x (128, 8) -> stable softplus.  Only column 0 is real;
    # padded columns are exactly zero and get sliced off in the wrapper.
    z = jnp.dot(h.astype(bf16), w4_ref[...], preferred_element_type=f32) + b[4:5, :8]
    o_ref[...] = jnp.maximum(z, 0.0) + jnp.log(1.0 + jnp.exp(-jnp.abs(z)))


# ----------------------------------------------------------------------------
# Wrapper: tiling / pallas_call plumbing (no HBM padding copies).
# ----------------------------------------------------------------------------
def visibility_forward_pallas(x, params, *, block_rows=2048, min_blocks=4):
    """x: [N, D_in] -> [N, 1] visibility."""
    N, D = x.shape
    out_pad = params['w4'].shape[1]          # 8-lane padded head

    # Row tile: as large as possible (per-grid-step overhead ~0.35us dominates small
    # tiles), but keep at least `min_blocks` grid steps when N allows so the pipeline
    # overlaps DMA and both v7x TensorCores get work.  tm is always a multiple of 8.
    tm_cap = _round_up(max(pl.cdiv(N, max(min_blocks, 1)), 8), 8)
    tm = min(_round_up(max(block_rows, 8), 8), tm_cap)
    grid = (pl.cdiv(N, tm),)                 # partial last tile handled by Pallas masking

    out = pl.pallas_call(
        _visibility_kernel,
        out_shape=jax.ShapeDtypeStruct((N, out_pad), jnp.float32),
        grid_spec=pltpu.PrefetchScalarGridSpec(
            num_scalar_prefetch=0,
            grid=grid,
            in_specs=[
                pl.BlockSpec((tm, D), lambda i: (i, 0)),                 # row tile of x
                pl.BlockSpec(params['w0'].shape, lambda i: (0, 0)),      # resident weights
                pl.BlockSpec(params['wmid'].shape, lambda i: (0, 0, 0)),
                pl.BlockSpec(params['w4'].shape, lambda i: (0, 0)),
                pl.BlockSpec(params['biases'].shape, lambda i: (0, 0)),
            ],
            out_specs=pl.BlockSpec((tm, out_pad), lambda i: (i, 0))),
        compiler_params=pltpu.CompilerParams(
            dimension_semantics=("parallel",),
            vmem_limit_bytes=32 * 1024 * 1024),   # safe on v7x's 64 MiB physical VMEM
    )(x.astype(jnp.float32), params['w0'], params['wmid'], params['w4'], params['biases'])

    return out[:, :1]


# ----------------------------------------------------------------------------
# Module equivalent of the PyTorch `Visibility` class.
# ----------------------------------------------------------------------------
class VisibilityPallas:
    def __init__(self, in_channel_xyz=60, in_channel_dir=24, W=128, *, key):
        self.in_channel_xyz = in_channel_xyz
        self.in_channel_dir = in_channel_dir
        self.W = W
        d_in = in_channel_xyz + in_channel_dir
        self.d_in = d_in

        out_pad = 8    # lane-friendly width for the 1-wide head (sliced back to 1)

        ks = jax.random.split(key, 5)

        def linear_init(k, fin, fout):
            # nn.Linear default init: U(-1/sqrt(fin), 1/sqrt(fin))
            bound = 1.0 / math.sqrt(fin)
            kw, kb = jax.random.split(k)
            w = jax.random.uniform(kw, (fin, fout), jnp.float32, -bound, bound)
            b = jax.random.uniform(kb, (fout,), jnp.float32, -bound, bound)
            return w, b

        w0, b0 = linear_init(ks[0], d_in, W)
        w1, b1 = linear_init(ks[1], W, W)
        w2, b2 = linear_init(ks[2], W, W)
        w3, b3 = linear_init(ks[3], W, W)
        w4, b4 = linear_init(ks[4], W, 1)

        # Unpadded f32 params (reference path keeps the original module semantics).
        self.ref_params = dict(w0=w0, b0=b0, w1=w1, b1=b1, w2=w2, b2=b2,
                               w3=w3, b3=b3, w4=w4, b4=b4)

        # Kernel params: bf16 weights (MXU-native, halved VMEM/DMA), f32 biases.
        # Biases consolidated into one (8, W) slab; b4 lives in row 4, lane 0.
        biases = jnp.zeros((8, W), jnp.float32)
        biases = biases.at[0].set(b0).at[1].set(b1).at[2].set(b2).at[3].set(b3)
        biases = biases.at[4, :1].set(b4)
        w4_p = jnp.zeros((W, out_pad), jnp.float32).at[:, :1].set(w4)

        self.params = dict(
            w0=w0.astype(jnp.bfloat16),                       # (84, 128)
            wmid=jnp.stack([w1, w2, w3]).astype(jnp.bfloat16),  # (3, 128, 128)
            w4=w4_p.astype(jnp.bfloat16),                     # (128, 8)
            biases=biases,                                    # (8, 128) f32
        )

    def forward(self, x, block_rows=2048, min_blocks=4):
        return visibility_forward_pallas(x, self.params,
                                         block_rows=block_rows, min_blocks=min_blocks)

    def reference(self, x):
        p = self.ref_params
        h = x.astype(jnp.float32)
        for wk, bk in (('w0', 'b0'), ('w1', 'b1'), ('w2', 'b2'), ('w3', 'b3')):
            h = jnp.maximum(h @ p[wk] + p[bk], 0.0)
        z = h @ p['w4'] + p['b4']
        return jax.nn.softplus(z)


# ----------------------------------------------------------------------------
if __name__ == "__main__":
    key = jax.random.PRNGKey(0)
    k_model, k_x = jax.random.split(key)

    model = VisibilityPallas(in_channel_xyz=60, in_channel_dir=24, W=128, key=k_model)

    N = 1000                              # not a multiple of the tile -> masked last block
    D = model.d_in                        # 60 + 24 = 84 input features (unpadded)
    x = jax.random.normal(k_x, (N, D), jnp.float32)

    # Default path: grid=(4,) with a partial last tile (tests OOB write masking).
    y_multi = jax.block_until_ready(model.forward(x))
    # Single big-tile path: one 1000-row tile.
    y_single = jax.block_until_ready(model.forward(x, min_blocks=1))

    y_ref = jax.block_until_ready(model.reference(x))

    for y in (y_multi, y_single):
        assert y.shape == (N, 1)
        assert bool(jnp.all(jnp.isfinite(y)))
        assert bool(jnp.all(y >= 0.0))    # softplus output is non-negative
        # bf16 matmuls vs f32 reference: 2e-2 tolerance covers the precision choice.
        assert np.allclose(np.asarray(y), np.asarray(y_ref), atol=2e-2, rtol=2e-2)

    print("KERNEL_OK")
</pallas_src>

<mosaic_0001>
module attributes {stable_mosaic.version = 11 : i64} {
  func.func @_visibility_kernel(%arg0: i32, %arg1: memref<256x84xf32, #tpu.memory_space<vmem>>, %arg2: memref<84x128xbf16, #tpu.memory_space<vmem>>, %arg3: memref<3x128x128xbf16, #tpu.memory_space<vmem>>, %arg4: memref<128x8xbf16, #tpu.memory_space<vmem>>, %arg5: memref<8x128xf32, #tpu.memory_space<vmem>>, %arg6: memref<256x8xf32, #tpu.memory_space<vmem>>) attributes {dimension_semantics = [#tpu.dimension_semantics<parallel>], iteration_bounds = array<i64: 4>, scalar_prefetch = 0 : i64, scratch_operands = 0 : i64, tpu.core_type = #tpu.core_type<tc>, window_params = [{transform_indices = @transform_0, window_bounds = array<i64: 256, 84>}, {pipeline_mode = #tpu.pipeline_mode<synchronous>, transform_indices = @transform_1, window_bounds = array<i64: 84, 128>}, {pipeline_mode = #tpu.pipeline_mode<synchronous>, transform_indices = @transform_2, window_bounds = array<i64: 3, 128, 128>}, {pipeline_mode = #tpu.pipeline_mode<synchronous>, transform_indices = @transform_3, window_bounds = array<i64: 128, 8>}, {pipeline_mode = #tpu.pipeline_mode<synchronous>, transform_indices = @transform_4, window_bounds = array<i64: 8, 128>}, {transform_indices = @transform_5, window_bounds = array<i64: 256, 8>}]} {
    %c0 = arith.constant 0 : index
    %c0_0 = arith.constant 0 : index
    %0 = vector.load %arg5[%c0, %c0_0] : memref<8x128xf32, #tpu.memory_space<vmem>>, vector<8x128xf32>
    %c0_1 = arith.constant 0 : index
    %c0_2 = arith.constant 0 : index
    %1 = vector.load %arg1[%c0_1, %c0_2] : memref<256x84xf32, #tpu.memory_space<vmem>>, vector<256x84xf32>
    %2 = arith.truncf %1 : vector<256x84xf32> to vector<256x84xbf16>
    %c0_3 = arith.constant 0 : index
    %c0_4 = arith.constant 0 : index
    %3 = vector.load %arg2[%c0_3, %c0_4] : memref<84x128xbf16, #tpu.memory_space<vmem>>, vector<84x128xbf16>
    %cst = arith.constant dense<0.000000e+00> : vector<256x128xf32>
    %4 = tpu.matmul %2, %3, %cst {dimension_numbers = #tpu.dot_dimension_numbers<[1], [0], [0], [1], [0, 0, 1, 1], [], []>} : vector<256x84xbf16>, vector<84x128xbf16>, vector<256x128xf32> -> vector<256x128xf32>
    %5 = vector.extract_strided_slice %0 {offsets = [0, 0], sizes = [1, 128], strides = [1, 1]} : vector<8x128xf32> to vector<1x128xf32>
    %6 = vector.broadcast %5 : vector<1x128xf32> to vector<256x128xf32>
    %7 = arith.addf %4, %6 : vector<256x128xf32>
    %cst_5 = arith.constant 0.000000e+00 : f32
    %8 = vector.broadcast %cst_5 : f32 to vector<256x128xf32>
    %9 = arith.maximumf %7, %8 : vector<256x128xf32>
    %10 = arith.truncf %9 : vector<256x128xf32> to vector<256x128xbf16>
    %c0_6 = arith.constant 0 : index
    %c0_7 = arith.constant 0 : index
    %c0_8 = arith.constant 0 : index
    %11 = vector.load %arg3[%c0_6, %c0_7, %c0_8] : memref<3x128x128xbf16, #tpu.memory_space<vmem>>, vector<1x128x128xbf16>
    %12 = vector.shape_cast %11 : vector<1x128x128xbf16> to vector<128x128xbf16>
    %cst_9 = arith.constant dense<0.000000e+00> : vector<256x128xf32>
    %13 = tpu.matmul %10, %12, %cst_9 {dimension_numbers = #tpu.dot_dimension_numbers<[1], [0], [0], [1], [0, 0, 1, 1], [], []>} : vector<256x128xbf16>, vector<128x128xbf16>, vector<256x128xf32> -> vector<256x128xf32>
    %14 = vector.extract_strided_slice %0 {offsets = [1, 0], sizes = [1, 128], strides = [1, 1]} : vector<8x128xf32> to vector<1x128xf32>
    %15 = vector.broadcast %14 : vector<1x128xf32> to vector<256x128xf32>
    %16 = arith.addf %13, %15 : vector<256x128xf32>
    %cst_10 = arith.constant 0.000000e+00 : f32
    %17 = vector.broadcast %cst_10 : f32 to vector<256x128xf32>
    %18 = arith.maximumf %16, %17 : vector<256x128xf32>
    %19 = arith.truncf %18 : vector<256x128xf32> to vector<256x128xbf16>
    %c1 = arith.constant 1 : index
    %c0_11 = arith.constant 0 : index
    %c0_12 = arith.constant 0 : index
    %20 = vector.load %arg3[%c1, %c0_11, %c0_12] : memref<3x128x128xbf16, #tpu.memory_space<vmem>>, vector<1x128x128xbf16>
    %21 = vector.shape_cast %20 : vector<1x128x128xbf16> to vector<128x128xbf16>
    %cst_13 = arith.constant dense<0.000000e+00> : vector<256x128xf32>
    %22 = tpu.matmul %19, %21, %cst_13 {dimension_numbers = #tpu.dot_dimension_numbers<[1], [0], [0], [1], [0, 0, 1, 1], [], []>} : vector<256x128xbf16>, vector<128x128xbf16>, vector<256x128xf32> -> vector<256x128xf32>
    %23 = vector.extract_strided_slice %0 {offsets = [2, 0], sizes = [1, 128], strides = [1, 1]} : vector<8x128xf32> to vector<1x128xf32>
    %24 = vector.broadcast %23 : vector<1x128xf32> to vector<256x128xf32>
    %25 = arith.addf %22, %24 : vector<256x128xf32>
    %cst_14 = arith.constant 0.000000e+00 : f32
    %26 = vector.broadcast %cst_14 : f32 to vector<256x128xf32>
    %27 = arith.maximumf %25, %26 : vector<256x128xf32>
    %28 = arith.truncf %27 : vector<256x128xf32> to vector<256x128xbf16>
    %c2 = arith.constant 2 : index
    %c0_15 = arith.constant 0 : index
    %c0_16 = arith.constant 0 : index
    %29 = vector.load %arg3[%c2, %c0_15, %c0_16] : memref<3x128x128xbf16, #tpu.memory_space<vmem>>, vector<1x128x128xbf16>
    %30 = vector.shape_cast %29 : vector<1x128x128xbf16> to vector<128x128xbf16>
    %cst_17 = arith.constant dense<0.000000e+00> : vector<256x128xf32>
    %31 = tpu.matmul %28, %30, %cst_17 {dimension_numbers = #tpu.dot_dimension_numbers<[1], [0], [0], [1], [0, 0, 1, 1], [], []>} : vector<256x128xbf16>, vector<128x128xbf16>, vector<256x128xf32> -> vector<256x128xf32>
    %32 = vector.extract_strided_slice %0 {offsets = [3, 0], sizes = [1, 128], strides = [1, 1]} : vector<8x128xf32> to vector<1x128xf32>
    %33 = vector.broadcast %32 : vector<1x128xf32> to vector<256x128xf32>
    %34 = arith.addf %31, %33 : vector<256x128xf32>
    %cst_18 = arith.constant 0.000000e+00 : f32
    %35 = vector.broadcast %cst_18 : f32 to vector<256x128xf32>
    %36 = arith.maximumf %34, %35 : vector<256x128xf32>
    %37 = arith.truncf %36 : vector<256x128xf32> to vector<256x128xbf16>
    %c0_19 = arith.constant 0 : index
    %c0_20 = arith.constant 0 : index
    %38 = vector.load %arg4[%c0_19, %c0_20] : memref<128x8xbf16, #tpu.memory_space<vmem>>, vector<128x8xbf16>
    %cst_21 = arith.constant dense<0.000000e+00> : vector<256x8xf32>
    %39 = tpu.matmul %37, %38, %cst_21 {dimension_numbers = #tpu.dot_dimension_numbers<[1], [0], [0], [1], [0, 0, 1, 1], [], []>} : vector<256x128xbf16>, vector<128x8xbf16>, vector<256x8xf32> -> vector<256x8xf32>
    %40 = vector.extract_strided_slice %0 {offsets = [4, 0], sizes = [1, 8], strides = [1, 1]} : vector<8x128xf32> to vector<1x8xf32>
    %41 = vector.broadcast %40 : vector<1x8xf32> to vector<256x8xf32>
    %42 = arith.addf %39, %41 : vector<256x8xf32>
    %cst_22 = arith.constant 0.000000e+00 : f32
    %43 = vector.broadcast %cst_22 : f32 to vector<256x8xf32>
    %44 = arith.maximumf %42, %43 : vector<256x8xf32>
    %45 = math.absf %42 : vector<256x8xf32>
    %cst_23 = arith.constant 0.000000e+00 : f32
    %46 = vector.broadcast %cst_23 : f32 to vector<256x8xf32>
    %47 = arith.subf %46, %45 : vector<256x8xf32>
    %48 = math.exp %47 : vector<256x8xf32>
    %cst_24 = arith.constant 1.000000e+00 : f32
    %49 = vector.broadcast %cst_24 : f32 to vector<256x8xf32>
    %50 = arith.addf %49, %48 : vector<256x8xf32>
    %51 = math.log %50 : vector<256x8xf32>
    %52 = arith.addf %44, %51 : vector<256x8xf32>
    %c0_25 = arith.constant 0 : index
    %c0_26 = arith.constant 0 : index
    %53 = vector.load %arg6[%c0_25, %c0_26] : memref<256x8xf32, #tpu.memory_space<vmem>>, vector<256x8xf32>
    tpu.vector_store %arg6[%c0_25, %c0_26], %52 {strides = array<i32>} : memref<256x8xf32, #tpu.memory_space<vmem>>, vector<256x8xf32>,
    return
  }
  func.func @transform_0(%arg0: i32) -> (i32, i32) {
    %c0_i32 = arith.constant 0 : i32
    %c0_i32_0 = arith.constant 0 : i32
    return %arg0, %c0_i32 : i32, i32
  }
  func.func @transform_1(%arg0: i32) -> (i32, i32) {
    %c0_i32 = arith.constant 0 : i32
    %c0_i32_0 = arith.constant 0 : i32
    %c0_i32_1 = arith.constant 0 : i32
    return %c0_i32, %c0_i32_0 : i32, i32
  }
  func.func @transform_2(%arg0: i32) -> (i32, i32, i32) {
    %c0_i32 = arith.constant 0 : i32
    %c0_i32_0 = arith.constant 0 : i32
    %c0_i32_1 = arith.constant 0 : i32
    %c0_i32_2 = arith.constant 0 : i32
    return %c0_i32, %c0_i32_0, %c0_i32_1 : i32, i32, i32
  }
  func.func @transform_3(%arg0: i32) -> (i32, i32) {
    %c0_i32 = arith.constant 0 : i32
    %c0_i32_0 = arith.constant 0 : i32
    %c0_i32_1 = arith.constant 0 : i32
    return %c0_i32, %c0_i32_0 : i32, i32
  }
  func.func @transform_4(%arg0: i32) -> (i32, i32) {
    %c0_i32 = arith.constant 0 : i32
    %c0_i32_0 = arith.constant 0 : i32
    %c0_i32_1 = arith.constant 0 : i32
    return %c0_i32, %c0_i32_0 : i32, i32
  }
  func.func @transform_5(%arg0: i32) -> (i32, i32) {
    %c0_i32 = arith.constant 0 : i32
    %c0_i32_0 = arith.constant 0 : i32
    return %arg0, %c0_i32 : i32, i32
  }
}

</mosaic_0001>

<bundles_post_ra>
// kernel: tpu_custom_call.1
= control target key start
LH: loop header
LB: loop body
LE: loop exit
PB: predicated region body
PF: predicated region fallthrough
CT: control target
= control target key end

     0   :  { %s3182_s18 = smov 0   ;;  %s3184_s19 = smov 0   ;;  %s3920_s0 = inlined_call_operand.vmem [shape: f32[1000,84], index: 0, kind: input, shape index: {}]   ;;  %s3921_s1 = inlined_call_operand.vmem [shape: bf16[84,128], index: 1, kind: input, shape index: {}]   ;;  %s3922_s2 = inlined_call_operand.vmem [shape: bf16[3,128,128], index: 2, kind: input, shape index: {}]   ;;  %s3923_s3 = inlined_call_operand.vmem [shape: bf16[128,8], index: 3, kind: input, shape index: {}]   ;;  %s3924_s4 = inlined_call_operand.vmem [shape: f32[8,128], index: 4, kind: input, shape index: {}]   ;;  %s3925_s5 = inlined_call_operand.vmem [shape: f32[1000,8], index: 5, kind: output, shape index: {}]  }
   0x1   :  { %s3186_s20 = smov 0  }
   0x2 LB: > { %s3195_s21 = sadd.s32 4294967295, %s3118_s20   ;;  %s3197_s22 = sadd.s32 1, %s3118_s20   ;;  %s3118_s20 = sphi %s3186_s20, %s3934_s20   ;;  %s3114_s19 = sphi %s3184_s19, %s3933_s19   ;;  %s3110_s18 = sphi %s3182_s18, %s3932_s18  }
   0x3   : > { %s129_s23 = ssub.s32 %s3118_s20, %s3197_s22  ;;  %s132_s24 = sadd.s32 1, %s3114_s19 }
   0x4   : > { %p130_p0 = scmp.eq.s32.totalorder %s129_s23, 0  ;;  %p142_p1 = scmp.ne.s32.totalorder %s3114_s19, %s3110_s18 }
   0x5   : > { %p143_p2 = scmp.eq.s32.totalorder %s3195_s21, 3  ;;  %p2331_p3 = scmp.ge.s32.totalorder %s3118_s20, 1 }
   0x6   : > { %s3205_s25 = scalar_select %p130_p0, %s3114_s19, %s132_s24  }
   0x7   : > { %p3207_p4 = por %p143_p2, %p142_p1  ;;  %p196_p5 = scmp.lt.s32.totalorder %s3118_s20, 5 }
   0x9   : > { %p197_p6 = pnand %p2331_p3, %p196_p5 }
   0xa   : > { %v2897_v0 = vld [vmem:[%s3921_s1] sm:$0xff] (!%p197_p6)   ;;  %v2898_v1 = vld [vmem:[%s3921_s1 + $0x8] sm:$0xff] (!%p197_p6)   ;;  %s3218_s6 = sshll.u32 (!%p197_p6), %s3195_s21, 5  ;;  %v2899_v2 = vld [vmem:[%s3921_s1 + $0x10] sm:$0xff] (!%p197_p6)   ;;  %vm344_vm0 = vcmask (!%p197_p6), 687104   ;;  %vm393_vm1 = vcmask (!%p197_p6), 1041408  }
   0xb   : > { %200 = sbr.rel (%p197_p6) target bundleno = 1302 (0x516), region = 40  ;;  %2559 = vmatprep.subr.bf16.mxu0 (!%p197_p6), %v2897_v0  ;;  %p232_p7 = scmp.lt.s32.totalorder (!%p197_p6), %s3218_s6, 124  ;;  %2795 = vmatprep.subr.bf16.mxu1 (!%p197_p6), %v2897_v0  ;;  %v2900_v3 = vld [vmem:[%s3921_s1 + $0x18] sm:$0xff] (!%p197_p6)   ;;  %v2901_v7 = vld [vmem:[%s3921_s1 + $0x20] sm:$0xff] (!%p197_p6)   ;;  %v2904_v25 = vld [vmem:[%s3922_s2 + $0x8] sm:$0xff] (!%p197_p6)   ;;  %vm1956_vm2 = vcmask (!%p197_p6), 64512  }
   0xc   : > { %2560 = vmatpush3.bf16.msra.mxu0 (!%p197_p6), %v2897_v0  ;;  %2801 = vmatpush3.bf16.msra.mxu1 (!%p197_p6), %v2897_v0  ;;  %v2902_v11 = vld [vmem:[%s3921_s1 + $0x28] ss:$0 sps:$4 sm:$0x33] (!%p197_p6)   ;;  %v2903_v18 = vld [vmem:[%s3922_s2] sm:$0xff] (!%p197_p6)   ;;  %v2905_v35 = vld [vmem:[%s3922_s2 + $0x10] sm:$0xff] (!%p197_p6)   ;;  %s224_s17 = sand.u32 (!%p197_p6), 1, %s3110_s18  }
   0xd   : > { %2561 = vmatprep.subr.bf16.mxu0 (!%p197_p6), %v2898_v1  ;;  %2796 = vmatprep.subr.bf16.mxu1 (!%p197_p6), %v2898_v1  ;;  %v395_v19 = vsel (!%p197_p6), %vm393_vm1, %v2902_v11, 0  ;;  %v2906_v39 = vld [vmem:[%s3922_s2 + $0x18] sm:$0xff] (!%p197_p6)   ;;  %v2907_v49 = vld [vmem:[%s3922_s2 + $0x20] sm:$0xff] (!%p197_p6)   ;;  %v2908_v54 = vld [vmem:[%s3922_s2 + $0x28] sm:$0xff] (!%p197_p6)   ;;  %s3613_s18 = sshll.u32 (!%p197_p6), %s224_s17, 8 }
   0xe   : > { %v2909_v61 = vld [vmem:[%s3922_s2 + $0x30] sm:$0xff] (!%p197_p6)   ;;  %v2910_v62 = vld [vmem:[%s3922_s2 + $0x38] sm:$0xff] (!%p197_p6)   ;;  %v2911_v63 = vld [vmem:[%s3922_s2 + $0x40] sm:$0xff] (!%p197_p6)   ;;  %s3626_s20 = scalar_lea.vmem (!%p197_p6), [#allocation2], %s3613_s18  }
   0xf   : > { %v2912_v0 = vld [vmem:[%s3922_s2 + $0x48] sm:$0xff] (!%p197_p6)  }
  0x10   : > { %2562 = vmatpush3.bf16.msra.mxu0 (!%p197_p6), %v2898_v1  ;;  %2802 = vmatpush3.bf16.msra.mxu1 (!%p197_p6), %v2898_v1  ;;  %v2913_v1 = vld [vmem:[%s3922_s2 + $0x50] sm:$0xff] (!%p197_p6)  }
  0x11   : > { %2563 = vmatprep.subr.bf16.mxu0 (!%p197_p6), %v2899_v2  ;;  %2797 = vmatprep.subr.bf16.mxu1 (!%p197_p6), %v2899_v2 }
  0x12   : > { %s233_s9 = scalar_select %p232_p7, %s3218_s6, 124 }
  0x13   : > { %s2438_s23 = sshll.u32 (%p3207_p4), %s3195_s21, 8 }
  0x14   : > { %s2334_s10 = sshll.u32 %s233_s9, 3  ;;  %2564 = vmatpush3.bf16.msra.mxu0 %v2899_v2  ;;  %2803 = vmatpush3.bf16.msra.mxu1 %v2899_v2  ;;  %v2914_v2 = vld [vmem:[%s3922_s2 + $0x58] sm:$0xff]   ;;  %s3788_s28 = scalar_lea.vmem (%p3207_p4), %s3925_s5, %s2438_s23  }
  0x15   : > { %s3228_s13 = scalar_lea.vmem %s3920_s0, %s2334_s10  ;;  %2565 = vmatprep.subr.bf16.mxu0 %v2900_v3  ;;  %2798 = vmatprep.subr.bf16.mxu1 %v2900_v3 }
  0x16   : > { %v248_v4 = vld [vmem:[%s3228_s13] sm:$0xff]  ;;  %v249_v5 = vld [vmem:[%s3228_s13 + $0x8] sm:$0xff]  ;;  %v250_v12 = vld [vmem:[%s3228_s13 + $0x10] sm:$0xff] }
  0x17   : > { %v280_v6 = vpack.c.bf16 %v249_v5, %v248_v4  ;;  %v264_v8 = vld [vmem:[%s3228_s13 + $0x80] sm:$0xff]  ;;  %v265_v9 = vld [vmem:[%s3228_s13 + $0x88] sm:$0xff]  ;;  %v251_v13 = vld [vmem:[%s3228_s13 + $0x18] sm:$0xff]  ;;  %v307_v5 = vlaneseq }
  0x18   : > { %v288_v10 = vpack.c.bf16 %v265_v9, %v264_v8  ;;  %2566 = vmatpush3.bf16.msra.mxu0 %v2900_v3  ;;  %2804 = vmatpush3.bf16.msra.mxu1 %v2900_v3  ;;  %v252_v14 = vld [vmem:[%s3228_s13 + $0x20] sm:$0xff]  ;;  %v253_v15 = vld [vmem:[%s3228_s13 + $0x28] sm:$0xff]  ;;  %v266_v16 = vld [vmem:[%s3228_s13 + $0x90] sm:$0xff]  ;;  %v281_v22 = vpack.c.bf16 %v251_v13, %v250_v12 }
  0x19   : > { %2571 = vmatprep.mubr.msk.bf16.mxu0 %vm344_vm0, %v280_v6  ;;  %2567 = vmatprep.subr.bf16.mxu0 %v2901_v7  ;;  %v267_v17 = vld [vmem:[%s3228_s13 + $0x98] sm:$0xff]  ;;  %v268_v20 = vld [vmem:[%s3228_s13 + $0xa0] sm:$0xff]  ;;  %v269_v21 = vld [vmem:[%s3228_s13 + $0xa8] sm:$0xff]  ;;  %v282_v23 = vpack.c.bf16 %v253_v15, %v252_v14  ;;  %v3329_v6 = vshrl.u32 %v307_v5, 7 }
  0x1a   : > { %2799 = vmatprep.subr.bf16.mxu1 %v2901_v7  ;;  %2587 = vmatprep.mubr.msk.bf16.mxu1 %vm344_vm0, %v288_v10  ;;  %v289_v24 = vpack.c.bf16 %v267_v17, %v266_v16  ;;  %v290_v26 = vpack.c.bf16 %v269_v21, %v268_v20  ;;  %v254_v27 = vld [vmem:[%s3228_s13 + $0x30] sm:$0xff]  ;;  %v255_v28 = vld [vmem:[%s3228_s13 + $0x38] sm:$0xff]  ;;  %v256_v29 = vld [vmem:[%s3228_s13 + $0x40] sm:$0xff] }
  0x1b   : > { %v257_v30 = vld [vmem:[%s3228_s13 + $0x48] sm:$0xff]  ;;  %v270_v31 = vld [vmem:[%s3228_s13 + $0xb0] sm:$0xff]  ;;  %v271_v32 = vld [vmem:[%s3228_s13 + $0xb8] sm:$0xff]  ;;  %v283_v36 = vpack.c.bf16 %v255_v28, %v254_v27 }
  0x1c   : > { %2568 = vmatpush3.bf16.msra.mxu0 %v2901_v7  ;;  %2805 = vmatpush3.bf16.msra.mxu1 %v2901_v7  ;;  %v272_v33 = vld [vmem:[%s3228_s13 + $0xc0] sm:$0xff]  ;;  %v273_v34 = vld [vmem:[%s3228_s13 + $0xc8] sm:$0xff]  ;;  %v284_v37 = vpack.c.bf16 %v257_v30, %v256_v29  ;;  %v291_v38 = vpack.c.bf16 %v271_v32, %v270_v31  ;;  %v258_v41 = vld [vmem:[%s3228_s13 + $0x50] sm:$0xff]  ;;  %v309_v7 = vsub.s32 0, %v3329_v6 }
  0x1d   : > { %2807 = vmatprep.subr.msk.bf16.mxu0 %vm393_vm1, %v2902_v11  ;;  %2808 = vmatprep.subr.msk.bf16.mxu1 %vm393_vm1, %v2902_v11  ;;  %v292_v40 = vpack.c.bf16 %v273_v34, %v272_v33  ;;  %v259_v42 = vld [vmem:[%s3228_s13 + $0x58] sm:$0xff]  ;;  %v260_v43 = vld [vmem:[%s3228_s13 + $0x60] sm:$0xff]  ;;  %v261_v44 = vld [vmem:[%s3228_s13 + $0x68] sm:$0xff] }
  0x1e   : > { %v274_v45 = vld [vmem:[%s3228_s13 + $0xd0] sm:$0xff]  ;;  %v275_v46 = vld [vmem:[%s3228_s13 + $0xd8] sm:$0xff]  ;;  %v276_v47 = vld [vmem:[%s3228_s13 + $0xe0] sm:$0xff]  ;;  %v285_v50 = vpack.c.bf16 %v259_v42, %v258_v41  ;;  %v286_v51 = vpack.c.bf16 %v261_v44, %v260_v43 }
  0x1f   : > { %v277_v48 = vld [vmem:[%s3228_s13 + $0xe8] sm:$0xff]  ;;  %v293_v52 = vpack.c.bf16 %v275_v46, %v274_v45  ;;  %v262_v55 = vld [vmem:[%s3228_s13 + $0x70] sm:$0xff]  ;;  %v263_v56 = vld [vmem:[%s3228_s13 + $0x78] sm:$0xff] }
  0x20   : > { %2570 = vmatpush3.bf16.msra.mxu0 %v395_v19  ;;  %2806 = vmatpush3.bf16.msra.mxu1 %v395_v19  ;;  %v294_v53 = vpack.c.bf16 %v277_v48, %v276_v47  ;;  %v278_v57 = vld [vmem:[%s3228_s13 + $0xf0] sm:$0xff]  ;;  %v279_v58 = vld [vmem:[%s3228_s13 + $0xf8] sm:$0xff]  ;;  %v287_v59 = vpack.c.bf16 %v263_v56, %v262_v55  ;;  %v2915_v3 = vld [vmem:[%s3922_s2 + $0x60] sm:$0xff]   ;;  %s1997_s13 = ssub.s32 (%p3207_p4), 125, %s3218_s6 }
  0x21   : > { %2603 = vmatprep.subr.bf16.mxu1 %v2903_v18  ;;  %v295_v60 = vpack.c.bf16 %v279_v58, %v278_v57  ;;  %2651 = vmatprep.subr.bf16.mxu0 %v2911_v63  ;;  %v2916_v4 = vld [vmem:[%s3922_s2 + $0x68] sm:$0xff]   ;;  %v3335_v8 = vld [vmem:[%s3924_s4] sm:$0xff]  ;;  %p1998_p8 = scmp.lt.s32.totalorder (%p3207_p4), %s1997_s13, 32 }
  0x22   : > { %v3338_v9 = vrot.slane %v3335_v8, %v309_v7 }
  0x23   : > { %2572 = vmatmul.mubr.msk.bf16.vlgmr.msra.gmra.mrb[0].mxu0 %vm344_vm0, %v281_v22  ;;  %2588 = vmatmul.mubr.msk.bf16.vlgmr.msra.gmra.mrb[0].mxu1 %vm344_vm0, %v289_v24 }
  0x24   : > { %2575 = vmatprep.mubr.msk.bf16.mxu0 %vm344_vm0, %v282_v23  ;;  %2591 = vmatprep.mubr.msk.bf16.mxu1 %vm344_vm0, %v290_v26 }
  0x25   : > { %2604 = vmatpush3.bf16.msra.mxu1 %v2903_v18  ;;  %2652 = vmatpush3.bf16.msra.mxu0 %v2911_v63 }
  0x26   : > { %2605 = vmatprep.subr.bf16.mxu1 %v2904_v25  ;;  %2653 = vmatprep.subr.bf16.mxu0 %v2912_v0 }
  0x29   : > { %2606 = vmatpush3.bf16.msra.mxu1 %v2904_v25  ;;  %2654 = vmatpush3.bf16.msra.mxu0 %v2912_v0 }
  0x2a   : > { %2607 = vmatprep.subr.bf16.mxu1 %v2905_v35  ;;  %2655 = vmatprep.subr.bf16.mxu0 %v2913_v1 }
  0x2b   : > { %2576 = vmatmul.mubr.msk.bf16.gmra.mrb[4].mxu0 %vm344_vm0, %v283_v36  ;;  %2592 = vmatmul.mubr.msk.bf16.gmra.mrb[4].mxu1 %vm344_vm0, %v291_v38 }
  0x2c   : > { %2579 = vmatprep.mubr.msk.bf16.mxu0 %vm344_vm0, %v284_v37  ;;  %2595 = vmatprep.mubr.msk.bf16.mxu1 %vm344_vm0, %v292_v40 }
  0x2d   : > { %2608 = vmatpush3.bf16.msra.mxu1 %v2905_v35  ;;  %2656 = vmatpush3.bf16.msra.mxu0 %v2913_v1 }
  0x2e   : > { %2609 = vmatprep.subr.bf16.mxu1 %v2906_v39  ;;  %2657 = vmatprep.subr.bf16.mxu0 %v2914_v2 }
  0x31   : > { %2610 = vmatpush3.bf16.msra.mxu1 %v2906_v39  ;;  %2658 = vmatpush3.bf16.msra.mxu0 %v2914_v2 }
  0x32   : > { %2611 = vmatprep.subr.bf16.mxu1 %v2907_v49  ;;  %2659 = vmatprep.subr.bf16.mxu0 %v2915_v3 }
  0x33   : > { %2580 = vmatmul.mubr.msk.bf16.gmra.mrb[8].mxu0 %vm344_vm0, %v285_v50  ;;  %2596 = vmatmul.mubr.msk.bf16.gmra.mrb[8].mxu1 %vm344_vm0, %v293_v52 }
  0x34   : > { %2583 = vmatprep.mubr.msk.bf16.mxu0 %vm344_vm0, %v286_v51  ;;  %2599 = vmatprep.mubr.msk.bf16.mxu1 %vm344_vm0, %v294_v53 }
  0x35   : > { %2612 = vmatpush3.bf16.msra.mxu1 %v2907_v49  ;;  %2660 = vmatpush3.bf16.msra.mxu0 %v2915_v3 }
  0x36   : > { %2613 = vmatprep.subr.bf16.mxu1 %v2908_v54  ;;  %2661 = vmatprep.subr.bf16.mxu0 %v2916_v4 }
  0x39   : > { %2614 = vmatpush3.bf16.msra.mxu1 %v2908_v54  ;;  %2662 = vmatpush3.bf16.msra.mxu0 %v2916_v4 }
  0x3a   : > { %2615 = vmatprep.subr.bf16.mxu1 %v2909_v61 }
  0x3b   : > { %2584 = vmatmul.mubr.msk.bf16.gmra.mrb[12].mxu0 %vm344_vm0, %v287_v59  ;;  %2600 = vmatmul.mubr.msk.bf16.gmra.mrb[12].mxu1 %vm344_vm0, %v295_v60 }
  0x3d   : > { %2616 = vmatpush3.bf16.msra.mxu1 %v2909_v61 }
  0x3e   : > { %2617 = vmatprep.subr.bf16.mxu1 %v2910_v62 }
  0x41   : > { %2618 = vmatpush3.bf16.msra.mxu1 %v2910_v62 }
  0xf6   : > { %v2573_v10 = vpop.f32.mrb[0].mxu0  ;;  %v2589_v13 = vpop.f32.mrb[0].mxu1 }
  0xf7   : > { %v440_v11 = vadd.f32 %v2573_v10, %v3338_v9  ;;  %v431_v12 = vpop.f32.mrb[1].mxu0  ;;  %v504_v16 = vadd.f32 %v2589_v13, %v3338_v9  ;;  %v495_v17 = vpop.f32.mrb[1].mxu1 }
  0xf8   : > { %v432_v14 = vadd.f32 %v431_v12, %v3338_v9  ;;  %v2574_v15 = vpop.f32.mrb[2].mxu0  ;;  %v496_v20 = vadd.f32 %v495_v17, %v3338_v9  ;;  %v2590_v21 = vpop.f32.mrb[2].mxu1 }
  0xf9   : > { %v443_v18 = vadd.f32 %v2574_v15, %v3338_v9  ;;  %v434_v19 = vpop.f32.mrb[3].mxu0  ;;  %v576_v23 = vmax.f32 %v504_v16, 0.0  ;;  %v507_v24 = vadd.f32 %v2590_v21, %v3338_v9  ;;  %v498_v25 = vpop.f32.mrb[3].mxu1  ;;  %v560_v26 = vmax.f32 %v440_v11, 0.0 }
  0xfa   : > { %v435_v22 = vadd.f32 %v434_v19, %v3338_v9  ;;  %v574_v28 = vmax.f32 %v496_v20, 0.0  ;;  %v499_v29 = vadd.f32 %v498_v25, %v3338_v9  ;;  %v558_v30 = vmax.f32 %v432_v14, 0.0 }
  0xfb   : > { %v561_v27 = vmax.f32 %v443_v18, 0.0  ;;  %v577_v32 = vmax.f32 %v507_v24, 0.0 }
  0xfc   : > { %v559_v31 = vmax.f32 %v435_v22, 0.0  ;;  %v575_v34 = vmax.f32 %v499_v29, 0.0 }
  0xfd   : > { %v591_v33 = vpack.c.bf16 %v561_v27, %v560_v26  ;;  %v3348_v37 = vpack.c.bf16 %v577_v32, %v576_v23 }
  0xfe   : > { %v590_v35 = vpack.c.bf16 %v559_v31, %v558_v30  ;;  %v2577_v36 = vpop.f32.mrb[4].mxu0  ;;  %v3351_v40 = vpack.c.bf16 %v575_v34, %v574_v28  ;;  %v2593_v41 = vpop.f32.mrb[4].mxu1 }
  0xff   : > { %v456_v38 = vadd.f32 %v2577_v36, %v3338_v9  ;;  %v447_v39 = vpop.f32.mrb[5].mxu0  ;;  %v520_v44 = vadd.f32 %v2593_v41, %v3338_v9  ;;  %v511_v45 = vpop.f32.mrb[5].mxu1 }
 0x100   : > { %v448_v42 = vadd.f32 %v447_v39, %v3338_v9  ;;  %v2578_v43 = vpop.f32.mrb[6].mxu0  ;;  %2619 = vmatprep.mubr.bf16.mxu1 %v590_v35  ;;  %v512_v48 = vadd.f32 %v511_v45, %v3338_v9  ;;  %v2594_v49 = vpop.f32.mrb[6].mxu1 }
 0x101   : > { %v459_v46 = vadd.f32 %v2578_v43, %v3338_v9  ;;  %v450_v47 = vpop.f32.mrb[7].mxu0  ;;  %2620 = vmatmul.mubr.bf16.vlgmr.msra.gmra.mrb[16].mxu1 %v591_v33  ;;  %v580_v51 = vmax.f32 %v520_v44, 0.0  ;;  %v523_v52 = vadd.f32 %v2594_v49, %v3338_v9  ;;  %v514_v53 = vpop.f32.mrb[7].mxu1  ;;  %v564_v54 = vmax.f32 %v456_v38, 0.0 }
 0x102   : > { %v451_v50 = vadd.f32 %v450_v47, %v3338_v9  ;;  %v578_v56 = vmax.f32 %v512_v48, 0.0  ;;  %v515_v57 = vadd.f32 %v514_v53, %v3338_v9  ;;  %v562_v58 = vmax.f32 %v448_v42, 0.0 }
 0x103   : > { %v565_v55 = vmax.f32 %v459_v46, 0.0  ;;  %v581_v60 = vmax.f32 %v523_v52, 0.0 }
 0x104   : > { %v563_v59 = vmax.f32 %v451_v50, 0.0  ;;  %v579_v62 = vmax.f32 %v515_v57, 0.0 }
 0x105   : > { %v593_v61 = vpack.c.bf16 %v565_v55, %v564_v54  ;;  %v3360_v1 = vpack.c.bf16 %v581_v60, %v580_v51 }
 0x106   : > { %v592_v63 = vpack.c.bf16 %v563_v59, %v562_v58  ;;  %v2581_v0 = vpop.f32.mrb[8].mxu0  ;;  %v600_v4 = vpack.c.bf16 %v579_v62, %v578_v56  ;;  %v2597_v5 = vpop.f32.mrb[8].mxu1 }
 0x107   : > { %v472_v2 = vadd.f32 %v2581_v0, %v3338_v9  ;;  %v463_v3 = vpop.f32.mrb[9].mxu0  ;;  %v536_v11 = vadd.f32 %v2597_v5, %v3338_v9  ;;  %v527_v12 = vpop.f32.mrb[9].mxu1  ;;  %v2921_v0 = vld [vmem:[%s3922_s2 + $0x90] sm:$0xff]   ;;  %v624_v5 = vsub.s32 1, %v3329_v6 }
 0x108   : > { %v464_v7 = vadd.f32 %v463_v3, %v3338_v9  ;;  %v2582_v10 = vpop.f32.mrb[10].mxu0  ;;  %2623 = vmatprep.mubr.bf16.mxu1 %v592_v63  ;;  %v528_v15 = vadd.f32 %v527_v12, %v3338_v9  ;;  %v2598_v16 = vpop.f32.mrb[10].mxu1  ;;  %v2918_v63 = vld [vmem:[%s3922_s2 + $0x78] sm:$0xff]   ;;  %v2924_v3 = vld [vmem:[%s3922_s2 + $0xa8] sm:$0xff]  }
 0x109   : > { %v475_v13 = vadd.f32 %v2582_v10, %v3338_v9  ;;  %v466_v14 = vpop.f32.mrb[11].mxu0  ;;  %2624 = vmatmul.mubr.bf16.gmra.mrb[20].mxu1 %v593_v61  ;;  %v584_v18 = vmax.f32 %v536_v11, 0.0  ;;  %v539_v19 = vadd.f32 %v2598_v16, %v3338_v9  ;;  %v530_v20 = vpop.f32.mrb[11].mxu1  ;;  %v568_v21 = vmax.f32 %v472_v2, 0.0  ;;  %v2923_v2 = vld [vmem:[%s3922_s2 + $0xa0] sm:$0xff]  }
 0x10a   : > { %v467_v17 = vadd.f32 %v466_v14, %v3338_v9  ;;  %v582_v23 = vmax.f32 %v528_v15, 0.0  ;;  %v531_v24 = vadd.f32 %v530_v20, %v3338_v9  ;;  %v566_v25 = vmax.f32 %v464_v7, 0.0 }
 0x10b   : > { %v569_v22 = vmax.f32 %v475_v13, 0.0  ;;  %v585_v27 = vmax.f32 %v539_v19, 0.0  ;;  %v3410_v7 = vrot.slane %v3335_v8, %v624_v5 }
 0x10c   : > { %v567_v26 = vmax.f32 %v467_v17, 0.0  ;;  %v583_v29 = vmax.f32 %v531_v24, 0.0 }
 0x10d   : > { %v595_v28 = vpack.c.bf16 %v569_v22, %v568_v21  ;;  %v603_v32 = vpack.c.bf16 %v585_v27, %v584_v18 }
 0x10e   : > { %v594_v30 = vpack.c.bf16 %v567_v26, %v566_v25  ;;  %v2585_v31 = vpop.f32.mrb[12].mxu0  ;;  %v602_v35 = vpack.c.bf16 %v583_v29, %v582_v23  ;;  %v2601_v36 = vpop.f32.mrb[12].mxu1 }
 0x10f   : > { %v488_v33 = vadd.f32 %v2585_v31, %v3338_v9  ;;  %v479_v34 = vpop.f32.mrb[13].mxu0  ;;  %v552_v41 = vadd.f32 %v2601_v36, %v3338_v9  ;;  %v543_v42 = vpop.f32.mrb[13].mxu1 }
 0x110   : > { %v480_v38 = vadd.f32 %v479_v34, %v3338_v9  ;;  %v2586_v39 = vpop.f32.mrb[14].mxu0  ;;  %2627 = vmatprep.mubr.bf16.mxu1 %v594_v30  ;;  %v544_v45 = vadd.f32 %v543_v42, %v3338_v9  ;;  %v2602_v46 = vpop.f32.mrb[14].mxu1 }
 0x111   : > { %v491_v43 = vadd.f32 %v2586_v39, %v3338_v9  ;;  %v482_v44 = vpop.f32.mrb[15].mxu0  ;;  %2628 = vmatmul.mubr.bf16.gmra.mrb[24].mxu1 %v595_v28  ;;  %v588_v48 = vmax.f32 %v552_v41, 0.0  ;;  %v555_v49 = vadd.f32 %v2602_v46, %v3338_v9  ;;  %v546_v50 = vpop.f32.mrb[15].mxu1  ;;  %v572_v51 = vmax.f32 %v488_v33, 0.0 }
 0x112   : > { %v483_v47 = vadd.f32 %v482_v44, %v3338_v9  ;;  %v586_v53 = vmax.f32 %v544_v45, 0.0  ;;  %v547_v54 = vadd.f32 %v546_v50, %v3338_v9  ;;  %v570_v55 = vmax.f32 %v480_v38, 0.0  ;;  %v2917_v9 = vld [vmem:[%s3922_s2 + $0x70] sm:$0xff]  }
 0x113   : > { %v573_v52 = vmax.f32 %v491_v43, 0.0  ;;  %v589_v57 = vmax.f32 %v555_v49, 0.0  ;;  %2663 = vmatprep.subr.bf16.mxu0 %v2917_v9 }
 0x114   : > { %v571_v56 = vmax.f32 %v483_v47, 0.0  ;;  %v587_v59 = vmax.f32 %v547_v54, 0.0  ;;  %2664 = vmatpush3.bf16.msra.mxu0 %v2917_v9 }
 0x115   : > { %v597_v58 = vpack.c.bf16 %v573_v52, %v572_v51  ;;  %v605_v61 = vpack.c.bf16 %v589_v57, %v588_v48  ;;  %2665 = vmatprep.subr.bf16.mxu0 %v2918_v63 }
 0x116   : > { %v596_v60 = vpack.c.bf16 %v571_v56, %v570_v55  ;;  %v604_v62 = vpack.c.bf16 %v587_v59, %v586_v53 }
 0x118   : > { %2631 = vmatprep.mubr.bf16.mxu1 %v596_v60  ;;  %2666 = vmatpush3.bf16.msra.mxu0 %v2918_v63 }
 0x119   : > { %2632 = vmatmul.mubr.bf16.gmra.mrb[28].mxu1 %v597_v58 }
 0x11a   : > { %2635 = vmatprep.mubr.bf16.mxu1 %v3351_v40  ;;  %v2920_v40 = vld [vmem:[%s3922_s2 + $0x88] sm:$0xff]  }
 0x121   : > { %2636 = vmatmul.mubr.bf16.gmra.mrb[32].mxu1 %v3348_v37  ;;  %v2919_v37 = vld [vmem:[%s3922_s2 + $0x80] sm:$0xff]  }
 0x122   : > { %2639 = vmatprep.mubr.bf16.mxu1 %v600_v4  ;;  %2699 = vmatprep.subr.bf16.mxu1 %v2919_v37  ;;  %v2925_v4 = vld [vmem:[%s3922_s2 + $0xb0] sm:$0xff]  }
 0x123   : > { %2700 = vmatpush3.bf16.msra.mxu1 %v2919_v37 }
 0x124   : > { %2701 = vmatprep.subr.bf16.mxu1 %v2920_v40 }
 0x127   : > { %2702 = vmatpush3.bf16.msra.mxu1 %v2920_v40 }
 0x128   : > { %2703 = vmatprep.subr.bf16.mxu1 %v2921_v0 }
 0x129   : > { %2640 = vmatmul.mubr.bf16.gmra.mrb[36].mxu1 %v3360_v1  ;;  %v2922_v1 = vld [vmem:[%s3922_s2 + $0x98] sm:$0xff]  }
 0x12a   : > { %2643 = vmatprep.mubr.bf16.mxu1 %v602_v35 }
 0x12b   : > { %2704 = vmatpush3.bf16.msra.mxu1 %v2921_v0 }
 0x12c   : > { %2705 = vmatprep.subr.bf16.mxu1 %v2922_v1 }
 0x12f   : > { %2706 = vmatpush3.bf16.msra.mxu1 %v2922_v1 }
 0x130   : > { %2707 = vmatprep.subr.bf16.mxu1 %v2923_v2 }
 0x131   : > { %2644 = vmatmul.mubr.bf16.gmra.mrb[40].mxu1 %v603_v32 }
 0x132   : > { %2647 = vmatprep.mubr.bf16.mxu1 %v604_v62 }
 0x133   : > { %2708 = vmatpush3.bf16.msra.mxu1 %v2923_v2 }
 0x134   : > { %2709 = vmatprep.subr.bf16.mxu1 %v2924_v3 }
 0x137   : > { %2710 = vmatpush3.bf16.msra.mxu1 %v2924_v3 }
 0x138   : > { %2711 = vmatprep.subr.bf16.mxu1 %v2925_v4 }
 0x139   : > { %2648 = vmatmul.mubr.bf16.gmra.mrb[44].mxu1 %v605_v61 }
 0x13b   : > { %2712 = vmatpush3.bf16.msra.mxu1 %v2925_v4 }
 0x1d4   : > { %v2621_v10 = vpop.f32.mrb[16].mxu1 }
 0x1d5   : > { %v717_v11 = vadd.f32 %v2621_v10, %v3410_v7  ;;  %v708_v12 = vpop.f32.mrb[17].mxu1 }
 0x1d6   : > { %v709_v13 = vadd.f32 %v708_v12, %v3410_v7  ;;  %v2622_v14 = vpop.f32.mrb[18].mxu1 }
 0x1d7   : > { %v720_v15 = vadd.f32 %v2622_v14, %v3410_v7  ;;  %v711_v16 = vpop.f32.mrb[19].mxu1  ;;  %v837_v18 = vmax.f32 %v717_v11, 0.0 }
 0x1d8   : > { %v712_v17 = vadd.f32 %v711_v16, %v3410_v7  ;;  %v835_v20 = vmax.f32 %v709_v13, 0.0 }
 0x1d9   : > { %v838_v19 = vmax.f32 %v720_v15, 0.0 }
 0x1da   : > { %v836_v21 = vmax.f32 %v712_v17, 0.0 }
 0x1db   : > { %v868_v22 = vpack.c.bf16 %v838_v19, %v837_v18 }
 0x1dc   : > { %v867_v23 = vpack.c.bf16 %v836_v21, %v835_v20  ;;  %v2625_v24 = vpop.f32.mrb[20].mxu1 }
 0x1dd   : > { %v733_v25 = vadd.f32 %v2625_v24, %v3410_v7  ;;  %v724_v26 = vpop.f32.mrb[21].mxu1 }
 0x1de   : > { %v725_v27 = vadd.f32 %v724_v26, %v3410_v7  ;;  %v2626_v28 = vpop.f32.mrb[22].mxu1  ;;  %2667 = vmatprep.mubr.bf16.mxu0 %v867_v23 }
 0x1df   : > { %v736_v29 = vadd.f32 %v2626_v28, %v3410_v7  ;;  %v727_v30 = vpop.f32.mrb[23].mxu1  ;;  %2668 = vmatmul.mubr.bf16.vlgmr.msra.gmra.mrb[16].mxu0 %v868_v22  ;;  %v841_v32 = vmax.f32 %v733_v25, 0.0 }
 0x1e0   : > { %v728_v31 = vadd.f32 %v727_v30, %v3410_v7  ;;  %v839_v34 = vmax.f32 %v725_v27, 0.0 }
 0x1e1   : > { %v842_v33 = vmax.f32 %v736_v29, 0.0 }
 0x1e2   : > { %v840_v35 = vmax.f32 %v728_v31, 0.0 }
 0x1e3   : > { %v870_v36 = vpack.c.bf16 %v842_v33, %v841_v32 }
 0x1e4   : > { %v869_v38 = vpack.c.bf16 %v840_v35, %v839_v34  ;;  %v2629_v39 = vpop.f32.mrb[24].mxu1 }
 0x1e5   : > { %v749_v41 = vadd.f32 %v2629_v39, %v3410_v7  ;;  %v740_v42 = vpop.f32.mrb[25].mxu1 }
 0x1e6   : > { %v741_v43 = vadd.f32 %v740_v42, %v3410_v7  ;;  %v2630_v44 = vpop.f32.mrb[26].mxu1  ;;  %2671 = vmatprep.mubr.bf16.mxu0 %v869_v38 }
 0x1e7   : > { %v752_v45 = vadd.f32 %v2630_v44, %v3410_v7  ;;  %v743_v46 = vpop.f32.mrb[27].mxu1  ;;  %2672 = vmatmul.mubr.bf16.gmra.mrb[20].mxu0 %v870_v36  ;;  %v845_v48 = vmax.f32 %v749_v41, 0.0 }
 0x1e8   : > { %v744_v47 = vadd.f32 %v743_v46, %v3410_v7  ;;  %v843_v50 = vmax.f32 %v741_v43, 0.0 }
 0x1e9   : > { %v846_v49 = vmax.f32 %v752_v45, 0.0 }
 0x1ea   : > { %v844_v51 = vmax.f32 %v744_v47, 0.0 }
 0x1eb   : > { %v872_v52 = vpack.c.bf16 %v846_v49, %v845_v48 }
 0x1ec   : > { %v871_v53 = vpack.c.bf16 %v844_v51, %v843_v50  ;;  %v2633_v54 = vpop.f32.mrb[28].mxu1 }
 0x1ed   : > { %v765_v55 = vadd.f32 %v2633_v54, %v3410_v7  ;;  %v756_v56 = vpop.f32.mrb[29].mxu1 }
 0x1ee   : > { %v757_v57 = vadd.f32 %v756_v56, %v3410_v7  ;;  %v2634_v58 = vpop.f32.mrb[30].mxu1  ;;  %2675 = vmatprep.mubr.bf16.mxu0 %v871_v53 }
 0x1ef   : > { %v768_v59 = vadd.f32 %v2634_v58, %v3410_v7  ;;  %v759_v60 = vpop.f32.mrb[31].mxu1  ;;  %2676 = vmatmul.mubr.bf16.gmra.mrb[24].mxu0 %v872_v52  ;;  %v849_v62 = vmax.f32 %v765_v55, 0.0 }
 0x1f0   : > { %v760_v61 = vadd.f32 %v759_v60, %v3410_v7  ;;  %v847_v63 = vmax.f32 %v757_v57, 0.0 }
 0x1f1   : > { %v850_v9 = vmax.f32 %v768_v59, 0.0 }
 0x1f2   : > { %v848_v37 = vmax.f32 %v760_v61, 0.0 }
 0x1f3   : > { %v874_v40 = vpack.c.bf16 %v850_v9, %v849_v62  ;;  %v2926_v9 = vld [vmem:[%s3922_s2 + $0xb8] sm:$0xff]  }
 0x1f4   : > { %v873_v0 = vpack.c.bf16 %v848_v37, %v847_v63  ;;  %v2637_v1 = vpop.f32.mrb[32].mxu1  ;;  %2713 = vmatprep.subr.bf16.mxu1 %v2926_v9  ;;  %v2927_v63 = vld [vmem:[%s3923_s3] sm:$0xff]   ;;  %v2929_v37 = vld [vmem:[%s3923_s3 + $0x10] sm:$0xff]  }
 0x1f5   : > { %v781_v2 = vadd.f32 %v2637_v1, %v3410_v7  ;;  %v772_v3 = vpop.f32.mrb[33].mxu1  ;;  %2714 = vmatpush3.bf16.msra.mxu1 %v2926_v9  ;;  %2747 = vmatprep.subr.bf16.mxu0 %v2927_v63  ;;  %v2932_v1 = vld [vmem:[%s3923_s3 + $0x28] sm:$0xff]  }
 0x1f6   : > { %v773_v4 = vadd.f32 %v772_v3, %v3410_v7  ;;  %v2638_v5 = vpop.f32.mrb[34].mxu1  ;;  %2679 = vmatprep.mubr.bf16.mxu0 %v873_v0  ;;  %2748 = vmatpush3.bf16.msra.mxu0 %v2927_v63  ;;  %v2931_v0 = vld [vmem:[%s3923_s3 + $0x20] sm:$0xff]   ;;  %v902_v3 = vsub.s32 2, %v3329_v6 }
 0x1f7   : > { %v784_v10 = vadd.f32 %v2638_v5, %v3410_v7  ;;  %v775_v11 = vpop.f32.mrb[35].mxu1  ;;  %2680 = vmatmul.mubr.bf16.gmra.mrb[28].mxu0 %v874_v40  ;;  %v853_v13 = vmax.f32 %v781_v2, 0.0  ;;  %v2930_v40 = vld [vmem:[%s3923_s3 + $0x18] sm:$0xff]   ;;  %v2933_v2 = vld [vmem:[%s3923_s3 + $0x30] sm:$0xff]  }
 0x1f8   : > { %v776_v12 = vadd.f32 %v775_v11, %v3410_v7  ;;  %v851_v15 = vmax.f32 %v773_v4, 0.0  ;;  %v3470_v4 = vrot.slane %v3335_v8, %v902_v3 }
 0x1f9   : > { %v854_v14 = vmax.f32 %v784_v10, 0.0 }
 0x1fa   : > { %v852_v16 = vmax.f32 %v776_v12, 0.0 }
 0x1fb   : > { %v876_v17 = vpack.c.bf16 %v854_v14, %v853_v13 }
 0x1fc   : > { %v875_v18 = vpack.c.bf16 %v852_v16, %v851_v15  ;;  %v2641_v19 = vpop.f32.mrb[36].mxu1 }
 0x1fd   : > { %v797_v20 = vadd.f32 %v2641_v19, %v3410_v7  ;;  %v788_v21 = vpop.f32.mrb[37].mxu1 }
 0x1fe   : > { %v789_v22 = vadd.f32 %v788_v21, %v3410_v7  ;;  %v2642_v23 = vpop.f32.mrb[38].mxu1  ;;  %2683 = vmatprep.mubr.bf16.mxu0 %v875_v18 }
 0x1ff   : > { %v800_v24 = vadd.f32 %v2642_v23, %v3410_v7  ;;  %v791_v25 = vpop.f32.mrb[39].mxu1  ;;  %2684 = vmatmul.mubr.bf16.gmra.mrb[32].mxu0 %v876_v17  ;;  %v857_v27 = vmax.f32 %v797_v20, 0.0 }
 0x200   : > { %v792_v26 = vadd.f32 %v791_v25, %v3410_v7  ;;  %v855_v29 = vmax.f32 %v789_v22, 0.0 }
 0x201   : > { %v858_v28 = vmax.f32 %v800_v24, 0.0 }
 0x202   : > { %v856_v30 = vmax.f32 %v792_v26, 0.0 }
 0x203   : > { %v878_v31 = vpack.c.bf16 %v858_v28, %v857_v27 }
 0x204   : > { %v877_v32 = vpack.c.bf16 %v856_v30, %v855_v29  ;;  %v2645_v33 = vpop.f32.mrb[40].mxu1 }
 0x205   : > { %v813_v34 = vadd.f32 %v2645_v33, %v3410_v7  ;;  %v804_v35 = vpop.f32.mrb[41].mxu1 }
 0x206   : > { %v805_v36 = vadd.f32 %v804_v35, %v3410_v7  ;;  %v2646_v38 = vpop.f32.mrb[42].mxu1  ;;  %2687 = vmatprep.mubr.bf16.mxu0 %v877_v32 }
 0x207   : > { %v816_v39 = vadd.f32 %v2646_v38, %v3410_v7  ;;  %v807_v41 = vpop.f32.mrb[43].mxu1  ;;  %2688 = vmatmul.mubr.bf16.gmra.mrb[36].mxu0 %v878_v31  ;;  %v861_v43 = vmax.f32 %v813_v34, 0.0 }
 0x208   : > { %v808_v42 = vadd.f32 %v807_v41, %v3410_v7  ;;  %v859_v45 = vmax.f32 %v805_v36, 0.0 }
 0x209   : > { %v862_v44 = vmax.f32 %v816_v39, 0.0 }
 0x20a   : > { %v860_v46 = vmax.f32 %v808_v42, 0.0 }
 0x20b   : > { %v880_v47 = vpack.c.bf16 %v862_v44, %v861_v43 }
 0x20c   : > { %v879_v48 = vpack.c.bf16 %v860_v46, %v859_v45  ;;  %v2649_v49 = vpop.f32.mrb[44].mxu1 }
 0x20d   : > { %v829_v50 = vadd.f32 %v2649_v49, %v3410_v7  ;;  %v820_v51 = vpop.f32.mrb[45].mxu1 }
 0x20e   : > { %v821_v52 = vadd.f32 %v820_v51, %v3410_v7  ;;  %v2650_v53 = vpop.f32.mrb[46].mxu1  ;;  %2691 = vmatprep.mubr.bf16.mxu0 %v879_v48 }
 0x20f   : > { %v832_v54 = vadd.f32 %v2650_v53, %v3410_v7  ;;  %v823_v55 = vpop.f32.mrb[47].mxu1  ;;  %2692 = vmatmul.mubr.bf16.gmra.mrb[40].mxu0 %v880_v47  ;;  %v865_v57 = vmax.f32 %v829_v50, 0.0 }
 0x210   : > { %v824_v56 = vadd.f32 %v823_v55, %v3410_v7  ;;  %v863_v59 = vmax.f32 %v821_v52, 0.0  ;;  %v2928_v7 = vld [vmem:[%s3923_s3 + $0x8] sm:$0xff]  }
 0x211   : > { %v866_v58 = vmax.f32 %v832_v54, 0.0  ;;  %2749 = vmatprep.subr.bf16.mxu0 %v2928_v7 }
 0x212   : > { %v864_v60 = vmax.f32 %v824_v56, 0.0  ;;  %2750 = vmatpush3.bf16.msra.mxu0 %v2928_v7 }
 0x213   : > { %v882_v61 = vpack.c.bf16 %v866_v58, %v865_v57  ;;  %2751 = vmatprep.subr.bf16.mxu0 %v2929_v37 }
 0x214   : > { %v881_v62 = vpack.c.bf16 %v864_v60, %v863_v59 }
 0x216   : > { %2695 = vmatprep.mubr.bf16.mxu0 %v881_v62  ;;  %2752 = vmatpush3.bf16.msra.mxu0 %v2929_v37 }
 0x217   : > { %2696 = vmatmul.mubr.bf16.gmra.mrb[44].mxu0 %v882_v61  ;;  %2753 = vmatprep.subr.bf16.mxu0 %v2930_v40 }
 0x21a   : > { %2754 = vmatpush3.bf16.msra.mxu0 %v2930_v40 }
 0x21b   : > { %2755 = vmatprep.subr.bf16.mxu0 %v2931_v0 }
 0x21e   : > { %2756 = vmatpush3.bf16.msra.mxu0 %v2931_v0 }
 0x21f   : > { %2757 = vmatprep.subr.bf16.mxu0 %v2932_v1 }
 0x222   : > { %2758 = vmatpush3.bf16.msra.mxu0 %v2932_v1 }
 0x223   : > { %2759 = vmatprep.subr.bf16.mxu0 %v2933_v2 }
 0x226   : > { %2760 = vmatpush3.bf16.msra.mxu0 %v2933_v2 }
 0x2b2   : > { %v2669_v5 = vpop.f32.mrb[16].mxu0 }
 0x2b3   : > { %v995_v10 = vadd.f32 %v2669_v5, %v3470_v4  ;;  %v986_v11 = vpop.f32.mrb[17].mxu0 }
 0x2b4   : > { %v987_v12 = vadd.f32 %v986_v11, %v3470_v4  ;;  %v2670_v13 = vpop.f32.mrb[18].mxu0 }
 0x2b5   : > { %v998_v14 = vadd.f32 %v2670_v13, %v3470_v4  ;;  %v989_v15 = vpop.f32.mrb[19].mxu0  ;;  %v1115_v17 = vmax.f32 %v995_v10, 0.0 }
 0x2b6   : > { %v990_v16 = vadd.f32 %v989_v15, %v3470_v4  ;;  %v1113_v19 = vmax.f32 %v987_v12, 0.0 }
 0x2b7   : > { %v1116_v18 = vmax.f32 %v998_v14, 0.0 }
 0x2b8   : > { %v1114_v20 = vmax.f32 %v990_v16, 0.0 }
 0x2b9   : > { %v1146_v21 = vpack.c.bf16 %v1116_v18, %v1115_v17 }
 0x2ba   : > { %v1145_v22 = vpack.c.bf16 %v1114_v20, %v1113_v19  ;;  %v2673_v23 = vpop.f32.mrb[20].mxu0 }
 0x2bb   : > { %v1011_v24 = vadd.f32 %v2673_v23, %v3470_v4  ;;  %v1002_v25 = vpop.f32.mrb[21].mxu0 }
 0x2bc   : > { %v1003_v26 = vadd.f32 %v1002_v25, %v3470_v4  ;;  %v2674_v27 = vpop.f32.mrb[22].mxu0  ;;  %2715 = vmatprep.mubr.bf16.mxu1 %v1145_v22 }
 0x2bd   : > { %v1014_v28 = vadd.f32 %v2674_v27, %v3470_v4  ;;  %v1005_v29 = vpop.f32.mrb[23].mxu0  ;;  %2716 = vmatmul.mubr.bf16.vlgmr.msra.gmra.mrb[48].mxu1 %v1146_v21  ;;  %v1119_v31 = vmax.f32 %v1011_v24, 0.0 }
 0x2be   : > { %v1006_v30 = vadd.f32 %v1005_v29, %v3470_v4  ;;  %v1117_v33 = vmax.f32 %v1003_v26, 0.0 }
 0x2bf   : > { %v1120_v32 = vmax.f32 %v1014_v28, 0.0 }
 0x2c0   : > { %v1118_v34 = vmax.f32 %v1006_v30, 0.0 }
 0x2c1   : > { %v1148_v35 = vpack.c.bf16 %v1120_v32, %v1119_v31 }
 0x2c2   : > { %v1147_v36 = vpack.c.bf16 %v1118_v34, %v1117_v33  ;;  %v2677_v38 = vpop.f32.mrb[24].mxu0 }
 0x2c3   : > { %v1027_v39 = vadd.f32 %v2677_v38, %v3470_v4  ;;  %v1018_v41 = vpop.f32.mrb[25].mxu0 }
 0x2c4   : > { %v1019_v42 = vadd.f32 %v1018_v41, %v3470_v4  ;;  %v2678_v43 = vpop.f32.mrb[26].mxu0  ;;  %2719 = vmatprep.mubr.bf16.mxu1 %v1147_v36 }
 0x2c5   : > { %v1030_v44 = vadd.f32 %v2678_v43, %v3470_v4  ;;  %v1021_v45 = vpop.f32.mrb[27].mxu0  ;;  %2720 = vmatmul.mubr.bf16.gmra.mrb[52].mxu1 %v1148_v35  ;;  %v1123_v47 = vmax.f32 %v1027_v39, 0.0 }
 0x2c6   : > { %v1022_v46 = vadd.f32 %v1021_v45, %v3470_v4  ;;  %v1121_v49 = vmax.f32 %v1019_v42, 0.0 }
 0x2c7   : > { %v1124_v48 = vmax.f32 %v1030_v44, 0.0 }
 0x2c8   : > { %v1122_v50 = vmax.f32 %v1022_v46, 0.0 }
 0x2c9   : > { %v1150_v51 = vpack.c.bf16 %v1124_v48, %v1123_v47 }
 0x2ca   : > { %v1149_v52 = vpack.c.bf16 %v1122_v50, %v1121_v49  ;;  %v2681_v53 = vpop.f32.mrb[28].mxu0 }
 0x2cb   : > { %v1043_v54 = vadd.f32 %v2681_v53, %v3470_v4  ;;  %v1034_v55 = vpop.f32.mrb[29].mxu0 }
 0x2cc   : > { %v1035_v56 = vadd.f32 %v1034_v55, %v3470_v4  ;;  %v2682_v57 = vpop.f32.mrb[30].mxu0  ;;  %2723 = vmatprep.mubr.bf16.mxu1 %v1149_v52 }
 0x2cd   : > { %v1046_v58 = vadd.f32 %v2682_v57, %v3470_v4  ;;  %v1037_v59 = vpop.f32.mrb[31].mxu0  ;;  %2724 = vmatmul.mubr.bf16.gmra.mrb[56].mxu1 %v1150_v51  ;;  %v1127_v61 = vmax.f32 %v1043_v54, 0.0 }
 0x2ce   : > { %v1038_v60 = vadd.f32 %v1037_v59, %v3470_v4  ;;  %v1125_v9 = vmax.f32 %v1035_v56, 0.0 }
 0x2cf   : > { %v1128_v62 = vmax.f32 %v1046_v58, 0.0 }
 0x2d0   : > { %v1126_v63 = vmax.f32 %v1038_v60, 0.0 }
 0x2d1   : > { %v1152_v7 = vpack.c.bf16 %v1128_v62, %v1127_v61  ;;  %v2934_v62 = vld [vmem:[%s3923_s3 + $0x38] sm:$0xff]  }
 0x2d2   : > { %v1151_v37 = vpack.c.bf16 %v1126_v63, %v1125_v9  ;;  %v2685_v40 = vpop.f32.mrb[32].mxu0  ;;  %2761 = vmatprep.subr.bf16.mxu0 %v2934_v62  ;;  %v1180_v9 = vsub.s32 3, %v3329_v6 }
 0x2d3   : > { %v1059_v0 = vadd.f32 %v2685_v40, %v3470_v4  ;;  %v1050_v1 = vpop.f32.mrb[33].mxu0  ;;  %2762 = vmatpush3.bf16.msra.mxu0 %v2934_v62 }
 0x2d4   : > { %v1051_v2 = vadd.f32 %v1050_v1, %v3470_v4  ;;  %v2686_v3 = vpop.f32.mrb[34].mxu0  ;;  %2727 = vmatprep.mubr.bf16.mxu1 %v1151_v37  ;;  %v3509_v63 = vrot.slane %v3335_v8, %v1180_v9 }
 0x2d5   : > { %v1062_v5 = vadd.f32 %v2686_v3, %v3470_v4  ;;  %v1053_v10 = vpop.f32.mrb[35].mxu0  ;;  %2728 = vmatmul.mubr.bf16.gmra.mrb[60].mxu1 %v1152_v7  ;;  %v1131_v12 = vmax.f32 %v1059_v0, 0.0 }
 0x2d6   : > { %v1054_v11 = vadd.f32 %v1053_v10, %v3470_v4  ;;  %v1129_v14 = vmax.f32 %v1051_v2, 0.0 }
 0x2d7   : > { %v1132_v13 = vmax.f32 %v1062_v5, 0.0 }
 0x2d8   : > { %v1130_v15 = vmax.f32 %v1054_v11, 0.0 }
 0x2d9   : > { %v1154_v16 = vpack.c.bf16 %v1132_v13, %v1131_v12 }
 0x2da   : > { %v1153_v17 = vpack.c.bf16 %v1130_v15, %v1129_v14  ;;  %v2689_v18 = vpop.f32.mrb[36].mxu0 }
 0x2db   : > { %v1075_v19 = vadd.f32 %v2689_v18, %v3470_v4  ;;  %v1066_v20 = vpop.f32.mrb[37].mxu0 }
 0x2dc   : > { %v1067_v21 = vadd.f32 %v1066_v20, %v3470_v4  ;;  %v2690_v22 = vpop.f32.mrb[38].mxu0  ;;  %2731 = vmatprep.mubr.bf16.mxu1 %v1153_v17 }
 0x2dd   : > { %v1078_v23 = vadd.f32 %v2690_v22, %v3470_v4  ;;  %v1069_v24 = vpop.f32.mrb[39].mxu0  ;;  %2732 = vmatmul.mubr.bf16.gmra.mrb[64].mxu1 %v1154_v16  ;;  %v1135_v26 = vmax.f32 %v1075_v19, 0.0 }
 0x2de   : > { %v1070_v25 = vadd.f32 %v1069_v24, %v3470_v4  ;;  %v1133_v28 = vmax.f32 %v1067_v21, 0.0 }
 0x2df   : > { %v1136_v27 = vmax.f32 %v1078_v23, 0.0 }
 0x2e0   : > { %v1134_v29 = vmax.f32 %v1070_v25, 0.0 }
 0x2e1   : > { %v1156_v30 = vpack.c.bf16 %v1136_v27, %v1135_v26 }
 0x2e2   : > { %v1155_v31 = vpack.c.bf16 %v1134_v29, %v1133_v28  ;;  %v2693_v32 = vpop.f32.mrb[40].mxu0 }
 0x2e3   : > { %v1091_v33 = vadd.f32 %v2693_v32, %v3470_v4  ;;  %v1082_v34 = vpop.f32.mrb[41].mxu0 }
 0x2e4   : > { %v1083_v35 = vadd.f32 %v1082_v34, %v3470_v4  ;;  %v2694_v36 = vpop.f32.mrb[42].mxu0  ;;  %2735 = vmatprep.mubr.bf16.mxu1 %v1155_v31 }
 0x2e5   : > { %v1094_v38 = vadd.f32 %v2694_v36, %v3470_v4  ;;  %v1085_v39 = vpop.f32.mrb[43].mxu0  ;;  %2736 = vmatmul.mubr.bf16.gmra.mrb[68].mxu1 %v1156_v30  ;;  %v1139_v42 = vmax.f32 %v1091_v33, 0.0 }
 0x2e6   : > { %v1086_v41 = vadd.f32 %v1085_v39, %v3470_v4  ;;  %v1137_v44 = vmax.f32 %v1083_v35, 0.0 }
 0x2e7   : > { %v1140_v43 = vmax.f32 %v1094_v38, 0.0 }
 0x2e8   : > { %v1138_v45 = vmax.f32 %v1086_v41, 0.0 }
 0x2e9   : > { %v1158_v46 = vpack.c.bf16 %v1140_v43, %v1139_v42 }
 0x2ea   : > { %v1157_v47 = vpack.c.bf16 %v1138_v45, %v1137_v44  ;;  %v2697_v48 = vpop.f32.mrb[44].mxu0 }
 0x2eb   : > { %v1107_v49 = vadd.f32 %v2697_v48, %v3470_v4  ;;  %v1098_v50 = vpop.f32.mrb[45].mxu0 }
 0x2ec   : > { %v1099_v51 = vadd.f32 %v1098_v50, %v3470_v4  ;;  %v2698_v52 = vpop.f32.mrb[46].mxu0  ;;  %2739 = vmatprep.mubr.bf16.mxu1 %v1157_v47 }
 0x2ed   : > { %v1110_v53 = vadd.f32 %v2698_v52, %v3470_v4  ;;  %v1101_v54 = vpop.f32.mrb[47].mxu0  ;;  %2740 = vmatmul.mubr.bf16.gmra.mrb[72].mxu1 %v1158_v46  ;;  %v1143_v56 = vmax.f32 %v1107_v49, 0.0 }
 0x2ee   : > { %v1102_v55 = vadd.f32 %v1101_v54, %v3470_v4  ;;  %v1141_v58 = vmax.f32 %v1099_v51, 0.0 }
 0x2ef   : > { %v1144_v57 = vmax.f32 %v1110_v53, 0.0 }
 0x2f0   : > { %v1142_v59 = vmax.f32 %v1102_v55, 0.0 }
 0x2f1   : > { %v1160_v60 = vpack.c.bf16 %v1144_v57, %v1143_v56 }
 0x2f2   : > { %v1159_v61 = vpack.c.bf16 %v1142_v59, %v1141_v58 }
 0x2f4   : > { %2743 = vmatprep.mubr.bf16.mxu1 %v1159_v61 }
 0x2f5   : > { %2744 = vmatmul.mubr.bf16.gmra.mrb[76].mxu1 %v1160_v60 }
 0x390   : > { %v2717_v4 = vpop.f32.mrb[48].mxu1 }
 0x391   : > { %v1273_v7 = vadd.f32 %v2717_v4, %v3509_v63  ;;  %v1264_v37 = vpop.f32.mrb[49].mxu1 }
 0x392   : > { %v1265_v40 = vadd.f32 %v1264_v37, %v3509_v63  ;;  %v2718_v0 = vpop.f32.mrb[50].mxu1 }
 0x393   : > { %v1276_v1 = vadd.f32 %v2718_v0, %v3509_v63  ;;  %v1267_v2 = vpop.f32.mrb[51].mxu1  ;;  %v1393_v5 = vmax.f32 %v1273_v7, 0.0 }
 0x394   : > { %v1268_v3 = vadd.f32 %v1267_v2, %v3509_v63  ;;  %v1391_v11 = vmax.f32 %v1265_v40, 0.0 }
 0x395   : > { %v1394_v10 = vmax.f32 %v1276_v1, 0.0 }
 0x396   : > { %v1392_v12 = vmax.f32 %v1268_v3, 0.0 }
 0x397   : > { %v1424_v13 = vpack.c.bf16 %v1394_v10, %v1393_v5 }
 0x398   : > { %v1423_v14 = vpack.c.bf16 %v1392_v12, %v1391_v11  ;;  %v2721_v8 = vpop.f32.mrb[52].mxu1 }
 0x399   : > { %v1289_v15 = vadd.f32 %v2721_v8, %v3509_v63  ;;  %v1280_v16 = vpop.f32.mrb[53].mxu1 }
 0x39a   : > { %v1281_v17 = vadd.f32 %v1280_v16, %v3509_v63  ;;  %v2722_v18 = vpop.f32.mrb[54].mxu1  ;;  %2763 = vmatprep.mubr.bf16.mxu0 %v1423_v14 }
 0x39b   : > { %v1292_v19 = vadd.f32 %v2722_v18, %v3509_v63  ;;  %v1283_v20 = vpop.f32.mrb[55].mxu1  ;;  %2764 = vmatmul.mubr.bf16.vlgmr.msra.gmra.mrb[48].mxu0 %v1424_v13  ;;  %v1397_v22 = vmax.f32 %v1289_v15, 0.0 }
 0x39c   : > { %v1284_v21 = vadd.f32 %v1283_v20, %v3509_v63  ;;  %v1395_v24 = vmax.f32 %v1281_v17, 0.0 }
 0x39d   : > { %v1398_v23 = vmax.f32 %v1292_v19, 0.0 }
 0x39e   : > { %v1396_v25 = vmax.f32 %v1284_v21, 0.0 }
 0x39f   : > { %v1426_v26 = vpack.c.bf16 %v1398_v23, %v1397_v22 }
 0x3a0   : > { %v1425_v27 = vpack.c.bf16 %v1396_v25, %v1395_v24  ;;  %v2725_v28 = vpop.f32.mrb[56].mxu1 }
 0x3a1   : > { %v1305_v29 = vadd.f32 %v2725_v28, %v3509_v63  ;;  %v1296_v30 = vpop.f32.mrb[57].mxu1 }
 0x3a2   : > { %v1297_v31 = vadd.f32 %v1296_v30, %v3509_v63  ;;  %v2726_v32 = vpop.f32.mrb[58].mxu1  ;;  %2767 = vmatprep.mubr.bf16.mxu0 %v1425_v27 }
 0x3a3   : > { %v1308_v33 = vadd.f32 %v2726_v32, %v3509_v63  ;;  %v1299_v34 = vpop.f32.mrb[59].mxu1  ;;  %2768 = vmatmul.mubr.bf16.gmra.mrb[52].mxu0 %v1426_v26  ;;  %v1401_v36 = vmax.f32 %v1305_v29, 0.0 }
 0x3a4   : > { %v1300_v35 = vadd.f32 %v1299_v34, %v3509_v63  ;;  %v1399_v39 = vmax.f32 %v1297_v31, 0.0 }
 0x3a5   : > { %v1402_v38 = vmax.f32 %v1308_v33, 0.0 }
 0x3a6   : > { %v1400_v41 = vmax.f32 %v1300_v35, 0.0 }
 0x3a7   : > { %v1428_v42 = vpack.c.bf16 %v1402_v38, %v1401_v36 }
 0x3a8   : > { %v1427_v43 = vpack.c.bf16 %v1400_v41, %v1399_v39  ;;  %v2729_v44 = vpop.f32.mrb[60].mxu1 }
 0x3a9   : > { %v1321_v45 = vadd.f32 %v2729_v44, %v3509_v63  ;;  %v1312_v46 = vpop.f32.mrb[61].mxu1 }
 0x3aa   : > { %v1313_v47 = vadd.f32 %v1312_v46, %v3509_v63  ;;  %v2730_v48 = vpop.f32.mrb[62].mxu1  ;;  %2771 = vmatprep.mubr.bf16.mxu0 %v1427_v43 }
 0x3ab   : > { %v1324_v49 = vadd.f32 %v2730_v48, %v3509_v63  ;;  %v1315_v50 = vpop.f32.mrb[63].mxu1  ;;  %2772 = vmatmul.mubr.bf16.gmra.mrb[56].mxu0 %v1428_v42  ;;  %v1405_v52 = vmax.f32 %v1321_v45, 0.0 }
 0x3ac   : > { %v1316_v51 = vadd.f32 %v1315_v50, %v3509_v63  ;;  %v1403_v54 = vmax.f32 %v1313_v47, 0.0 }
 0x3ad   : > { %v1406_v53 = vmax.f32 %v1324_v49, 0.0 }
 0x3ae   : > { %v1404_v55 = vmax.f32 %v1316_v51, 0.0 }
 0x3af   : > { %v1430_v56 = vpack.c.bf16 %v1406_v53, %v1405_v52  ;;  %v1457_v52 = vsub.s32 4, %v3329_v6  ;;  %v3063_v53 = vld [vmem:[%s3924_s4] sm:$0xff] }
 0x3b0   : > { %v1429_v57 = vpack.c.bf16 %v1404_v55, %v1403_v54  ;;  %v2733_v58 = vpop.f32.mrb[64].mxu1 }
 0x3b1   : > { %v1337_v59 = vadd.f32 %v2733_v58, %v3509_v63  ;;  %v1328_v60 = vpop.f32.mrb[65].mxu1  ;;  %v3547_v54 = vrot.slane %v3063_v53, %v1457_v52 }
 0x3b2   : > { %v1329_v61 = vadd.f32 %v1328_v60, %v3509_v63  ;;  %v2734_v62 = vpop.f32.mrb[66].mxu1  ;;  %2775 = vmatprep.mubr.bf16.mxu0 %v1429_v57 }
 0x3b3   : > { %v1340_v9 = vadd.f32 %v2734_v62, %v3509_v63  ;;  %v1331_v4 = vpop.f32.mrb[67].mxu1  ;;  %2776 = vmatmul.mubr.bf16.gmra.mrb[60].mxu0 %v1430_v56  ;;  %v1409_v37 = vmax.f32 %v1337_v59, 0.0 }
 0x3b4   : > { %v1332_v7 = vadd.f32 %v1331_v4, %v3509_v63  ;;  %v1407_v0 = vmax.f32 %v1329_v61, 0.0 }
 0x3b5   : > { %v1410_v40 = vmax.f32 %v1340_v9, 0.0 }
 0x3b6   : > { %v1408_v1 = vmax.f32 %v1332_v7, 0.0 }
 0x3b7   : > { %v1432_v2 = vpack.c.bf16 %v1410_v40, %v1409_v37 }
 0x3b8   : > { %v1431_v3 = vpack.c.bf16 %v1408_v1, %v1407_v0  ;;  %v2737_v5 = vpop.f32.mrb[68].mxu1 }
 0x3b9   : > { %v1353_v10 = vadd.f32 %v2737_v5, %v3509_v63  ;;  %v1344_v11 = vpop.f32.mrb[69].mxu1 }
 0x3ba   : > { %v1345_v12 = vadd.f32 %v1344_v11, %v3509_v63  ;;  %v2738_v13 = vpop.f32.mrb[70].mxu1  ;;  %2779 = vmatprep.mubr.bf16.mxu0 %v1431_v3 }
 0x3bb   : > { %v1356_v14 = vadd.f32 %v2738_v13, %v3509_v63  ;;  %v1347_v8 = vpop.f32.mrb[71].mxu1  ;;  %2780 = vmatmul.mubr.bf16.gmra.mrb[64].mxu0 %v1432_v2  ;;  %v1413_v16 = vmax.f32 %v1353_v10, 0.0 }
 0x3bc   : > { %v1348_v15 = vadd.f32 %v1347_v8, %v3509_v63  ;;  %v1411_v18 = vmax.f32 %v1345_v12, 0.0 }
 0x3bd   : > { %v1414_v17 = vmax.f32 %v1356_v14, 0.0 }
 0x3be   : > { %v1412_v19 = vmax.f32 %v1348_v15, 0.0 }
 0x3bf   : > { %v1434_v20 = vpack.c.bf16 %v1414_v17, %v1413_v16 }
 0x3c0   : > { %v1433_v21 = vpack.c.bf16 %v1412_v19, %v1411_v18  ;;  %v2741_v22 = vpop.f32.mrb[72].mxu1 }
 0x3c1   : > { %v1369_v23 = vadd.f32 %v2741_v22, %v3509_v63  ;;  %v1360_v24 = vpop.f32.mrb[73].mxu1 }
 0x3c2   : > { %v1361_v25 = vadd.f32 %v1360_v24, %v3509_v63  ;;  %v2742_v26 = vpop.f32.mrb[74].mxu1  ;;  %2783 = vmatprep.mubr.bf16.mxu0 %v1433_v21 }
 0x3c3   : > { %v1372_v27 = vadd.f32 %v2742_v26, %v3509_v63  ;;  %v1363_v28 = vpop.f32.mrb[75].mxu1  ;;  %2784 = vmatmul.mubr.bf16.gmra.mrb[68].mxu0 %v1434_v20  ;;  %v1417_v30 = vmax.f32 %v1369_v23, 0.0 }
 0x3c4   : > { %v1364_v29 = vadd.f32 %v1363_v28, %v3509_v63  ;;  %v1415_v32 = vmax.f32 %v1361_v25, 0.0 }
 0x3c5   : > { %v1418_v31 = vmax.f32 %v1372_v27, 0.0 }
 0x3c6   : > { %v1416_v33 = vmax.f32 %v1364_v29, 0.0 }
 0x3c7   : > { %v1436_v34 = vpack.c.bf16 %v1418_v31, %v1417_v30 }
 0x3c8   : > { %v1435_v35 = vpack.c.bf16 %v1416_v33, %v1415_v32  ;;  %v2745_v36 = vpop.f32.mrb[76].mxu1 }
 0x3c9   : > { %v1385_v38 = vadd.f32 %v2745_v36, %v3509_v63  ;;  %v1376_v39 = vpop.f32.mrb[77].mxu1 }
 0x3ca   : > { %v1377_v41 = vadd.f32 %v1376_v39, %v3509_v63  ;;  %v2746_v42 = vpop.f32.mrb[78].mxu1  ;;  %2787 = vmatprep.mubr.bf16.mxu0 %v1435_v35 }
 0x3cb   : > { %v1388_v43 = vadd.f32 %v2746_v42, %v3509_v63  ;;  %v1379_v44 = vpop.f32.mrb[79].mxu1  ;;  %2788 = vmatmul.mubr.bf16.gmra.mrb[72].mxu0 %v1436_v34  ;;  %v1421_v46 = vmax.f32 %v1385_v38, 0.0 }
 0x3cc   : > { %v1380_v45 = vadd.f32 %v1379_v44, %v3509_v63  ;;  %v1419_v48 = vmax.f32 %v1377_v41, 0.0 }
 0x3cd   : > { %v1422_v47 = vmax.f32 %v1388_v43, 0.0 }
 0x3ce   : > { %v1420_v49 = vmax.f32 %v1380_v45, 0.0 }
 0x3cf   : > { %v1438_v50 = vpack.c.bf16 %v1422_v47, %v1421_v46 }
 0x3d0   : > { %v1437_v51 = vpack.c.bf16 %v1420_v49, %v1419_v48 }
 0x3d2   : > { %2791 = vmatprep.mubr.bf16.mxu0 %v1437_v51 }
 0x3d3   : > { %2792 = vmatmul.mubr.bf16.gmra.mrb[76].mxu0 %v1438_v50 }
 0x46e   : > { %v2765_v55 = vpop.f32.mrb[48].mxu0 }
 0x46f   : > { %v3550_v56 = vadd.f32 %v2765_v55, %v3547_v54  ;;  %v1541_v63 = vpop.f32.mrb[49].mxu0 }
 0x470   : > { %v3553_v57 = vadd.f32 %v1541_v63, %v3547_v54  ;;  %v2766_v58 = vpop.f32.mrb[50].mxu0 }
 0x471   : > { %v1702_v59 = vand.u32 2147483647, %v3550_v56  ;;  %v3557_v60 = vadd.f32 %v2766_v58, %v3547_v54  ;;  %v1544_v6 = vpop.f32.mrb[51].mxu0 }
 0x472   : > { %v1700_v61 = vand.u32 2147483647, %v3553_v57  ;;  %v3561_v62 = vadd.f32 %v1544_v6, %v3547_v54 }
 0x473   : > { %v1734_v9 = vsub.f32 0.0, %v1702_v59  ;;  %v1703_v4 = vand.u32 2147483647, %v3557_v60 }
 0x474   : > { %v1732_v7 = vsub.f32 0.0, %v1700_v61  ;;  %v1701_v37 = vand.u32 2147483647, %v3561_v62 }
 0x475   : > { %v1768_v40 = vmul.f32 1.442695, %v1734_v9  ;;  %v1735_v0 = vsub.f32 0.0, %v1703_v4  ;;  %v1670_v9 = vmax.f32 %v3550_v56, 0.0  ;;  %v1671_v56 = vmax.f32 %v3557_v60, 0.0 }
 0x476   : > { %v1764_v1 = vmul.f32 1.442695, %v1732_v7  ;;  %v1733_v2 = vsub.f32 0.0, %v1701_v37  ;;  %v2769_v3 = vpop.f32.mrb[52].mxu0 }
 0x477   : > { %2935 = vpow2.f32 %v1768_v40  ;;  %v1770_v5 = vmul.f32 1.442695, %v1735_v0  ;;  %v3566_v10 = vadd.f32 %v2769_v3, %v3547_v54  ;;  %v1557_v11 = vpop.f32.mrb[53].mxu0  ;;  %v1668_v0 = vmax.f32 %v3553_v57, 0.0 }
 0x478   : > { %2937 = vpow2.f32 %v1764_v1  ;;  %v1766_v12 = vmul.f32 1.442695, %v1733_v2  ;;  %v3569_v13 = vadd.f32 %v1557_v11, %v3547_v54  ;;  %v2770_v14 = vpop.f32.mrb[54].mxu0  ;;  %v1669_v11 = vmax.f32 %v3561_v62, 0.0 }
 0x479   : > { %2939 = vpow2.f32 %v1770_v5  ;;  %v1706_v8 = vand.u32 2147483647, %v3566_v10  ;;  %v3573_v15 = vadd.f32 %v2770_v14, %v3547_v54  ;;  %v1560_v16 = vpop.f32.mrb[55].mxu0 }
 0x47a   : > { %2941 = vpow2.f32 %v1766_v12  ;;  %v1704_v17 = vand.u32 2147483647, %v3569_v13  ;;  %v3577_v18 = vadd.f32 %v1560_v16, %v3547_v54 }
 0x47b   : > { %v1738_v19 = vsub.f32 0.0, %v1706_v8  ;;  %v1707_v20 = vand.u32 2147483647, %v3573_v15 }
 0x47c   : > { %v1736_v21 = vsub.f32 0.0, %v1704_v17  ;;  %v1705_v22 = vand.u32 2147483647, %v3577_v18 }
 0x47d   : > { %v1776_v23 = vmul.f32 1.442695, %v1738_v19  ;;  %v1739_v24 = vsub.f32 0.0, %v1707_v20 }
 0x47e   : > { %v1772_v25 = vmul.f32 1.442695, %v1736_v21  ;;  %v1737_v26 = vsub.f32 0.0, %v1705_v22  ;;  %v2773_v27 = vpop.f32.mrb[56].mxu0 }
 0x47f   : > { %2943 = vpow2.f32 %v1776_v23  ;;  %v1778_v28 = vmul.f32 1.442695, %v1739_v24  ;;  %v3582_v29 = vadd.f32 %v2773_v27, %v3547_v54  ;;  %v1573_v30 = vpop.f32.mrb[57].mxu0 }
 0x480   : > { %2945 = vpow2.f32 %v1772_v25  ;;  %v1774_v31 = vmul.f32 1.442695, %v1737_v26  ;;  %v3585_v32 = vadd.f32 %v1573_v30, %v3547_v54  ;;  %v2774_v33 = vpop.f32.mrb[58].mxu0  ;;  %v1674_v25 = vmax.f32 %v3566_v10, 0.0 }
 0x481   : > { %v2936_v34 = vpop.eup %2935  ;;  %2947 = vpow2.f32 %v1778_v28  ;;  %v1710_v35 = vand.u32 2147483647, %v3582_v29  ;;  %v3589_v36 = vadd.f32 %v2774_v33, %v3547_v54  ;;  %v1576_v38 = vpop.f32.mrb[59].mxu0 }
 0x482   : > { %v2938_v39 = vpop.eup %2937  ;;  %v1830_v41 = vadd.f32 1.0, %v2936_v34  ;;  %2949 = vpow2.f32 %v1774_v31  ;;  %v1708_v42 = vand.u32 2147483647, %v3585_v32  ;;  %v3594_v50 = vadd.f32 %v1576_v38, %v3547_v54 }
 0x483   : > { %v2940_v43 = vpop.eup %2939  ;;  %v1828_v44 = vadd.f32 1.0, %v2938_v39  ;;  %v1742_v45 = vsub.f32 0.0, %v1710_v35  ;;  %v1711_v46 = vand.u32 2147483647, %v3589_v36 }
 0x484   : > { %v2942_v47 = vpop.eup %2941  ;;  %2951 = vlog2.f32 %v1830_v41  ;;  %v1831_v48 = vadd.f32 1.0, %v2940_v43  ;;  %v1740_v49 = vsub.f32 0.0, %v1708_v42  ;;  %v1709_v63 = vand.u32 2147483647, %v3594_v50 }
 0x485   : > { %2953 = vlog2.f32 %v1828_v44  ;;  %v1829_v51 = vadd.f32 1.0, %v2942_v47  ;;  %v1784_v52 = vmul.f32 1.442695, %v1742_v45  ;;  %v1743_v53 = vsub.f32 0.0, %v1711_v46 }
 0x486   : > { %2955 = vlog2.f32 %v1831_v48  ;;  %v1780_v55 = vmul.f32 1.442695, %v1740_v49  ;;  %v2777_v58 = vpop.f32.mrb[60].mxu0  ;;  %v1741_v4 = vsub.f32 0.0, %v1709_v63  ;;  %v1672_v47 = vmax.f32 %v3569_v13, 0.0 }
 0x487   : > { %2957 = vlog2.f32 %v1829_v51  ;;  %v1786_v59 = vmul.f32 1.442695, %v1743_v53  ;;  %v3598_v6 = vadd.f32 %v2777_v58, %v3547_v54  ;;  %v1589_v61 = vpop.f32.mrb[61].mxu0 }
 0x488   : > { %2959 = vpow2.f32 %v1784_v52  ;;  %v3602_v7 = vadd.f32 %v1589_v61, %v3547_v54  ;;  %v2778_v37 = vpop.f32.mrb[62].mxu0  ;;  %v1782_v16 = vmul.f32 1.442695, %v1741_v4 }
 0x489   : > { %v2944_v40 = vpop.eup %2943  ;;  %2961 = vpow2.f32 %v1780_v55  ;;  %v1714_v1 = vand.u32 2147483647, %v3598_v6  ;;  %v3608_v2 = vadd.f32 %v2778_v37, %v3547_v54  ;;  %v1592_v3 = vpop.f32.mrb[63].mxu0 }
 0x48a   : > { %v2946_v5 = vpop.eup %2945  ;;  %v1834_v12 = vadd.f32 1.0, %v2944_v40  ;;  %2963 = vpow2.f32 %v1786_v59  ;;  %v1712_v57 = vand.u32 2147483647, %v3602_v7  ;;  %v3617_v22 = vadd.f32 %v1592_v3, %v3547_v54 }
 0x48b   : > { %v2948_v14 = vpop.eup %2947  ;;  %v1832_v8 = vadd.f32 1.0, %v2946_v5  ;;  %v1746_v17 = vsub.f32 0.0, %v1714_v1  ;;  %v1715_v21 = vand.u32 2147483647, %v3608_v2  ;;  %v1675_v3 = vmax.f32 %v3573_v15, 0.0 }
 0x48c   : > { %v2950_v19 = vpop.eup %2949  ;;  %2965 = vlog2.f32 %v1834_v12  ;;  %v1835_v20 = vadd.f32 1.0, %v2948_v14  ;;  %v1744_v23 = vsub.f32 0.0, %v1712_v57  ;;  %v1713_v27 = vand.u32 2147483647, %v3617_v22 }
 0x48d   : > { %2967 = vlog2.f32 %v1832_v8  ;;  %v1833_v60 = vadd.f32 1.0, %v2950_v19  ;;  %v1792_v62 = vmul.f32 1.442695, %v1746_v17  ;;  %v1747_v26 = vsub.f32 0.0, %v1715_v21 }
 0x48e   : > { %v2952_v24 = vpop.eup %2951  ;;  %2969 = vlog2.f32 %v1835_v20  ;;  %v2781_v28 = vpop.f32.mrb[64].mxu0  ;;  %v1788_v33 = vmul.f32 1.442695, %v1744_v23  ;;  %v1745_v42 = vsub.f32 0.0, %v1713_v27  ;;  %v1673_v8 = vmax.f32 %v3577_v18, 0.0 }
 0x48f   : > { %v2954_v30 = vpop.eup %2953  ;;  %v1865_v31 = vmul.f32 0.6931472, %v2952_v24  ;;  %2971 = vlog2.f32 %v1833_v60  ;;  %v3622_v34 = vadd.f32 %v2781_v28, %v3547_v54  ;;  %v1605_v35 = vpop.f32.mrb[65].mxu0  ;;  %v1794_v41 = vmul.f32 1.442695, %v1747_v26 }
 0x490   : > { %v2956_v38 = vpop.eup %2955  ;;  %v1861_v39 = vmul.f32 0.6931472, %v2954_v30  ;;  %2973 = vpow2.f32 %v1782_v16  ;;  %v2782_v43 = vpop.f32.mrb[66].mxu0  ;;  %v1790_v53 = vmul.f32 1.442695, %v1745_v42  ;;  %v3634_v4 = vadd.f32 %v1605_v35, %v3547_v54 }
 0x491   : > { %v2958_v44 = vpop.eup %2957  ;;  %v1926_v45 = vadd.f32 %v1865_v31, %v1670_v9  ;;  %v1867_v46 = vmul.f32 0.6931472, %v2956_v38  ;;  %2975 = vpow2.f32 %v1792_v62  ;;  %v1608_v48 = vpop.f32.mrb[67].mxu0  ;;  %v1718_v13 = vand.u32 2147483647, %v3622_v34 }
 0x492   : > { %v2960_v49 = vpop.eup %2959  ;;  %v1924_v51 = vadd.f32 %v1861_v39, %v1668_v0  ;;  %v1863_v52 = vmul.f32 0.6931472, %v2958_v44  ;;  %2977 = vpow2.f32 %v1788_v33  ;;  %v3639_v0 = vadd.f32 %v2782_v43, %v3547_v54 }
 0x493   : > { %v2962_v55 = vpop.eup %2961  ;;  %1959 = vst.msk [vmem:[%s3626_s20 + $0x10] sm:$0xff] %vm1956_vm2, %v1926_v45  ;;  %v1927_v63 = vadd.f32 %v1867_v46, %v1671_v56  ;;  %v1838_v58 = vadd.f32 1.0, %v2960_v49  ;;  %2979 = vpow2.f32 %v1794_v41  ;;  %v1750_v40 = vsub.f32 0.0, %v1718_v13 }
 0x494   : > { %v2964_v59 = vpop.eup %2963  ;;  %1957 = vst.msk [vmem:[%s3626_s20] sm:$0xff] %vm1956_vm2, %v1924_v51  ;;  %v1925_v61 = vadd.f32 %v1863_v52, %v1669_v11  ;;  %v1836_v9 = vadd.f32 1.0, %v2962_v55  ;;  %2981 = vpow2.f32 %v1790_v53  ;;  %v1716_v5 = vand.u32 2147483647, %v3634_v4 }
 0x495   : > { %1960 = vst.msk [vmem:[%s3626_s20 + $0x18] sm:$0xff] %vm1956_vm2, %v1927_v63  ;;  %2983 = vlog2.f32 %v1838_v58  ;;  %v1839_v37 = vadd.f32 1.0, %v2964_v59  ;;  %v3646_v56 = vadd.f32 %v1608_v48, %v3547_v54  ;;  %v1800_v16 = vmul.f32 1.442695, %v1750_v40 }
 0x496   : > { %v2966_v1 = vpop.eup %2965  ;;  %1958 = vst.msk [vmem:[%s3626_s20 + $0x8] sm:$0xff] %vm1956_vm2, %v1925_v61  ;;  %2985 = vlog2.f32 %v1836_v9  ;;  %v2785_v11 = vpop.f32.mrb[68].mxu0  ;;  %v1678_v20 = vmax.f32 %v3582_v29, 0.0  ;;  %v1748_v15 = vsub.f32 0.0, %v1716_v5  ;;  %v1719_v21 = vand.u32 2147483647, %v3639_v0 }
 0x497   : > { %v2968_v12 = vpop.eup %2967  ;;  %v1873_v14 = vmul.f32 0.6931472, %v2966_v1  ;;  %2987 = vlog2.f32 %v1839_v37  ;;  %v1621_v17 = vpop.f32.mrb[69].mxu0  ;;  %v1717_v18 = vand.u32 2147483647, %v3646_v56  ;;  %v1676_v42 = vmax.f32 %v3585_v32, 0.0 }
 0x498   : > { %v2970_v57 = vpop.eup %2969  ;;  %v1869_v19 = vmul.f32 0.6931472, %v2968_v12  ;;  %2989 = vpow2.f32 %v1800_v16  ;;  %v2786_v24 = vpop.f32.mrb[70].mxu0  ;;  %v1796_v30 = vmul.f32 1.442695, %v1748_v15  ;;  %v1751_v29 = vsub.f32 0.0, %v1719_v21 }
 0x499   : > { %v2972_v60 = vpop.eup %2971  ;;  %v1930_v62 = vadd.f32 %v1873_v14, %v1674_v25  ;;  %v1875_v23 = vmul.f32 0.6931472, %v2970_v57  ;;  %v1624_v31 = vpop.f32.mrb[71].mxu0  ;;  %v1749_v10 = vsub.f32 0.0, %v1717_v18  ;;  %v3657_v25 = vadd.f32 %v2785_v11, %v3547_v54 }
 0x49a   : > { %v2974_v26 = vpop.eup %2973  ;;  %v1928_v27 = vadd.f32 %v1869_v19, %v1672_v47  ;;  %v1871_v28 = vmul.f32 0.6931472, %v2972_v60  ;;  %2991 = vpow2.f32 %v1796_v30  ;;  %v1679_v45 = vmax.f32 %v3589_v36, 0.0 }
 0x49b   : > { %v2976_v33 = vpop.eup %2975  ;;  %1963 = vst.msk [vmem:[%s3626_s20 + $0x30] sm:$0xff] %vm1956_vm2, %v1930_v62  ;;  %v1931_v35 = vadd.f32 %v1875_v23, %v1675_v3  ;;  %v1837_v38 = vadd.f32 1.0, %v2974_v26  ;;  %v1802_v47 = vmul.f32 1.442695, %v1751_v29  ;;  %v1722_v51 = vand.u32 2147483647, %v3657_v25 }
 0x49c   : > { %v2978_v39 = vpop.eup %2977  ;;  %1961 = vst.msk [vmem:[%s3626_s20 + $0x20] sm:$0xff] %vm1956_vm2, %v1928_v27  ;;  %v1929_v41 = vadd.f32 %v1871_v28, %v1673_v8  ;;  %v1842_v43 = vadd.f32 1.0, %v2976_v33  ;;  %v3669_v52 = vadd.f32 %v1621_v17, %v3547_v54  ;;  %v1798_v63 = vmul.f32 1.442695, %v1749_v10 }
 0x49d   : > { %v2980_v44 = vpop.eup %2979  ;;  %1964 = vst.msk [vmem:[%s3626_s20 + $0x38] sm:$0xff] %vm1956_vm2, %v1931_v35  ;;  %2993 = vlog2.f32 %v1837_v38  ;;  %v1840_v46 = vadd.f32 1.0, %v2978_v39  ;;  %v3672_v36 = vadd.f32 %v2786_v24, %v3547_v54  ;;  %v1677_v61 = vmax.f32 %v3594_v50, 0.0 }
 0x49e   : > { %v2982_v48 = vpop.eup %2981  ;;  %1962 = vst.msk [vmem:[%s3626_s20 + $0x28] sm:$0xff] %vm1956_vm2, %v1929_v41  ;;  %2995 = vlog2.f32 %v1842_v43  ;;  %v1843_v49 = vadd.f32 1.0, %v2980_v44  ;;  %v2789_v32 = vpop.f32.mrb[72].mxu0  ;;  %v1754_v9 = vsub.f32 0.0, %v1722_v51  ;;  %v1720_v3 = vand.u32 2147483647, %v3669_v52 }
 0x49f   : > { %v2984_v53 = vpop.eup %2983  ;;  %2997 = vlog2.f32 %v1840_v46  ;;  %v1841_v55 = vadd.f32 1.0, %v2982_v48  ;;  %v1637_v58 = vpop.f32.mrb[73].mxu0  ;;  %v3677_v5 = vadd.f32 %v1624_v31, %v3547_v54  ;;  %v1723_v57 = vand.u32 2147483647, %v3672_v36 }
 0x4a0   : > { %v2986_v13 = vpop.eup %2985  ;;  %v1881_v59 = vmul.f32 0.6931472, %v2984_v53  ;;  %2999 = vlog2.f32 %v1843_v49  ;;  %v2790_v37 = vpop.f32.mrb[74].mxu0  ;;  %v1808_v8 = vmul.f32 1.442695, %v1754_v9  ;;  %v1752_v17 = vsub.f32 0.0, %v1720_v3 }
 0x4a1   : > { %v2988_v40 = vpop.eup %2987  ;;  %v1877_v1 = vmul.f32 0.6931472, %v2986_v13  ;;  %3001 = vlog2.f32 %v1841_v55  ;;  %v1640_v11 = vpop.f32.mrb[75].mxu0  ;;  %v1682_v15 = vmax.f32 %v3598_v6, 0.0  ;;  %v1755_v60 = vsub.f32 0.0, %v1723_v57 }
 0x4a2   : > { %v1934_v12 = vadd.f32 %v1881_v59, %v1678_v20  ;;  %v1883_v14 = vmul.f32 0.6931472, %v2988_v40  ;;  %3003 = vpow2.f32 %v1802_v47  ;;  %v2990_v16 = vpop.eup %2989  ;;  %v1804_v20 = vmul.f32 1.442695, %v1752_v17 }
 0x4a3   : > { %v1932_v50 = vadd.f32 %v1877_v1, %v1676_v42  ;;  %3005 = vpow2.f32 %v1798_v63  ;;  %v1846_v21 = vadd.f32 1.0, %v2990_v16  ;;  %v1721_v62 = vand.u32 2147483647, %v3677_v5 }
 0x4a4   : > { %1967 = vst.msk [vmem:[%s3626_s20 + $0x50] sm:$0xff] %vm1956_vm2, %v1934_v12  ;;  %v1935_v19 = vadd.f32 %v1883_v14, %v1679_v45  ;;  %3007 = vpow2.f32 %v1808_v8  ;;  %v3687_v23 = vadd.f32 %v2789_v32, %v3547_v54  ;;  %v2992_v18 = vpop.eup %2991  ;;  %v1680_v24 = vmax.f32 %v3602_v7, 0.0 }
 0x4a5   : > { %1965 = vst.msk [vmem:[%s3626_s20 + $0x40] sm:$0xff] %vm1956_vm2, %v1932_v50  ;;  %v1683_v26 = vmax.f32 %v3608_v2, 0.0  ;;  %3009 = vlog2.f32 %v1846_v21  ;;  %v3694_v6 = vadd.f32 %v1637_v58, %v3547_v54  ;;  %v1844_v30 = vadd.f32 1.0, %v2992_v18 }
 0x4a6   : > { %1968 = vst.msk [vmem:[%s3626_s20 + $0x58] sm:$0xff] %vm1956_vm2, %v1935_v19  ;;  %v2793_v27 = vpop.f32.mrb[76].mxu0  ;;  %3011 = vpow2.f32 %v1804_v20  ;;  %v1810_v29 = vmul.f32 1.442695, %v1755_v60  ;;  %v1753_v31 = vsub.f32 0.0, %v1721_v62  ;;  %v3698_v39 = vadd.f32 %v2790_v37, %v3547_v54 }
 0x4a7   : > { %v2994_v28 = vpop.eup %2993  ;;  %v1653_v33 = vpop.f32.mrb[77].mxu0  ;;  %v1726_v10 = vand.u32 2147483647, %v3687_v23  ;;  %v3701_v7 = vadd.f32 %v1640_v11, %v3547_v54  ;;  %3013 = vlog2.f32 %v1844_v30  ;;  %v1724_v43 = vand.u32 2147483647, %v3694_v6 }
 0x4a8   : > { %v2996_v35 = vpop.eup %2995  ;;  %v1879_v38 = vmul.f32 0.6931472, %v2994_v28  ;;  %v1806_v42 = vmul.f32 1.442695, %v1753_v31  ;;  %3015 = vpow2.f32 %v1810_v29  ;;  %v2794_v48 = vpop.f32.mrb[78].mxu0  ;;  %v1681_v13 = vmax.f32 %v3617_v22, 0.0 }
 0x4a9   : > { %v2998_v2 = vpop.eup %2997  ;;  %v1889_v41 = vmul.f32 0.6931472, %v2996_v35  ;;  %v1758_v47 = vsub.f32 0.0, %v1726_v10  ;;  %v1756_v53 = vsub.f32 0.0, %v1724_v43  ;;  %v1656_v55 = vpop.f32.mrb[79].mxu0  ;;  %v1686_v40 = vmax.f32 %v3622_v34, 0.0 }
 0x4aa   : > { %v3000_v44 = vpop.eup %2999  ;;  %v1933_v45 = vadd.f32 %v1879_v38, %v1677_v61  ;;  %v1885_v46 = vmul.f32 0.6931472, %v2998_v2  ;;  %3017 = vpow2.f32 %v1806_v42  ;;  %v1727_v3 = vand.u32 2147483647, %v3698_v39 }
 0x4ab   : > { %v3002_v49 = vpop.eup %3001  ;;  %v1938_v51 = vadd.f32 %v1889_v41, %v1682_v15  ;;  %v1891_v32 = vmul.f32 0.6931472, %v3000_v44  ;;  %v1816_v61 = vmul.f32 1.442695, %v1758_v47  ;;  %v1812_v8 = vmul.f32 1.442695, %v1756_v53 }
 0x4ac   : > { %v3004_v63 = vpop.eup %3003  ;;  %1966 = vst.msk [vmem:[%s3626_s20 + $0x48] sm:$0xff] %vm1956_vm2, %v1933_v45  ;;  %v1936_v58 = vadd.f32 %v1885_v46, %v1680_v24  ;;  %v1887_v59 = vmul.f32 0.6931472, %v3002_v49  ;;  %v1759_v16 = vsub.f32 0.0, %v1727_v3  ;;  %v1725_v50 = vand.u32 2147483647, %v3701_v7 }
 0x4ad   : > { %v3006_v9 = vpop.eup %3005  ;;  %1971 = vst.msk [vmem:[%s3626_s20 + $0x70] sm:$0xff] %vm1956_vm2, %v1938_v51  ;;  %v1939_v37 = vadd.f32 %v1891_v32, %v1683_v26  ;;  %v1847_v1 = vadd.f32 1.0, %v3004_v63  ;;  %3019 = vpow2.f32 %v1816_v61  ;;  %v3719_v34 = vadd.f32 %v2793_v27, %v3547_v54 }
 0x4ae   : > { %v3008_v11 = vpop.eup %3007  ;;  %1969 = vst.msk [vmem:[%s3626_s20 + $0x60] sm:$0xff] %vm1956_vm2, %v1936_v58  ;;  %v1937_v12 = vadd.f32 %v1887_v59, %v1681_v13  ;;  %v1845_v14 = vadd.f32 1.0, %v3006_v9  ;;  %v3722_v57 = vadd.f32 %v1653_v33, %v3547_v54  ;;  %v3725_v19 = vadd.f32 %v2794_v48, %v3547_v54 }
 0x4af   : > { %1972 = vst.msk [vmem:[%s3626_s20 + $0x78] sm:$0xff] %vm1956_vm2, %v1939_v37  ;;  %3021 = vlog2.f32 %v1847_v1  ;;  %v1850_v22 = vadd.f32 1.0, %v3008_v11  ;;  %v3010_v17 = vpop.eup %3009  ;;  %v1818_v20 = vmul.f32 1.442695, %v1759_v16  ;;  %v1757_v60 = vsub.f32 0.0, %v1725_v50 }
 0x4b0   : > { %1970 = vst.msk [vmem:[%s3626_s20 + $0x68] sm:$0xff] %vm1956_vm2, %v1937_v12  ;;  %3023 = vlog2.f32 %v1845_v14  ;;  %v3012_v15 = vpop.eup %3011  ;;  %v1897_v21 = vmul.f32 0.6931472, %v3010_v17  ;;  %v1730_v18 = vand.u32 2147483647, %v3719_v34  ;;  %v1684_v27 = vmax.f32 %v3634_v4, 0.0 }
 0x4b1   : > { %3025 = vlog2.f32 %v1850_v22  ;;  %v1848_v62 = vadd.f32 1.0, %v3012_v15  ;;  %v3014_v24 = vpop.eup %3013  ;;  %v1814_v28 = vmul.f32 1.442695, %v1757_v60  ;;  %v1728_v33 = vand.u32 2147483647, %v3722_v57 }
 0x4b2   : > { %3027 = vpow2.f32 %v1812_v8  ;;  %v1942_v26 = vadd.f32 %v1897_v21, %v1686_v40  ;;  %v3016_v30 = vpop.eup %3015  ;;  %v1893_v29 = vmul.f32 0.6931472, %v3014_v24  ;;  %v1762_v31 = vsub.f32 0.0, %v1730_v18 }
 0x4b3   : > { %3029 = vpow2.f32 %v1818_v20  ;;  %v1851_v38 = vadd.f32 1.0, %v3016_v30  ;;  %v1731_v10 = vand.u32 2147483647, %v3725_v19  ;;  %v1760_v4 = vsub.f32 0.0, %v1728_v33 }
 0x4b4   : > { %3031 = vlog2.f32 %v1848_v62  ;;  %v3018_v35 = vpop.eup %3017  ;;  %1975 = vst.msk [vmem:[%s3626_s20 + $0x90] sm:$0xff] %vm1956_vm2, %v1942_v26  ;;  %v1940_v2 = vadd.f32 %v1893_v29, %v1684_v27  ;;  %v1824_v42 = vmul.f32 1.442695, %v1762_v31  ;;  %v3734_v44 = vadd.f32 %v1656_v55, %v3547_v54 }
 0x4b5   : > { %3033 = vpow2.f32 %v1814_v28  ;;  %v1849_v41 = vadd.f32 1.0, %v3018_v35  ;;  %v1763_v43 = vsub.f32 0.0, %v1731_v10  ;;  %v1820_v46 = vmul.f32 1.442695, %v1760_v4 }
 0x4b6   : > { %3035 = vlog2.f32 %v1851_v38  ;;  %1973 = vst.msk [vmem:[%s3626_s20 + $0x80] sm:$0xff] %vm1956_vm2, %v1940_v2  ;;  %v1687_v32 = vmax.f32 %v3639_v0, 0.0  ;;  %v1729_v63 = vand.u32 2147483647, %v3734_v44  ;;  %v1685_v54 = vmax.f32 %v3646_v56, 0.0 }
 0x4b7   : > { %v3020_v45 = vpop.eup %3019  ;;  %3037 = vlog2.f32 %v1849_v41  ;;  %v1826_v49 = vmul.f32 1.442695, %v1763_v43  ;;  %v1690_v13 = vmax.f32 %v3657_v25, 0.0  ;;  %v1688_v25 = vmax.f32 %v3669_v52, 0.0 }
 0x4b8   : > { %v1854_v48 = vadd.f32 1.0, %v3020_v45  ;;  %3039 = vpow2.f32 %v1824_v42  ;;  %v1761_v37 = vsub.f32 0.0, %v1729_v63  ;;  %v1691_v15 = vmax.f32 %v3672_v36, 0.0 }
 0x4b9   : > { %v3022_v47 = vpop.eup %3021  ;;  %3041 = vpow2.f32 %v1820_v46  ;;  %v1689_v52 = vmax.f32 %v3677_v5, 0.0  ;;  %v1694_v36 = vmax.f32 %v3687_v23, 0.0  ;;  %v1692_v38 = vmax.f32 %v3694_v6, 0.0 }
 0x4ba   : > { %v3024_v51 = vpop.eup %3023  ;;  %v1899_v53 = vmul.f32 0.6931472, %v3022_v47  ;;  %3043 = vlog2.f32 %v1854_v48  ;;  %v1822_v56 = vmul.f32 1.442695, %v1761_v37  ;;  %v1695_v23 = vmax.f32 %v3698_v39, 0.0 }
 0x4bb   : > { %v3026_v58 = vpop.eup %3025  ;;  %v1895_v55 = vmul.f32 0.6931472, %v3024_v51  ;;  %3045 = vpow2.f32 %v1826_v49  ;;  %v1693_v46 = vmax.f32 %v3701_v7, 0.0  ;;  %v1698_v39 = vmax.f32 %v3719_v34, 0.0 }
 0x4bc   : > { %v3028_v59 = vpop.eup %3027  ;;  %v1943_v61 = vadd.f32 %v1899_v53, %v1687_v32  ;;  %v1905_v9 = vmul.f32 0.6931472, %v3026_v58  ;;  %v1696_v7 = vmax.f32 %v3722_v57, 0.0  ;;  %v1697_v34 = vmax.f32 %v3734_v44, 0.0 }
 0x4bd   : > { %v3030_v0 = vpop.eup %3029  ;;  %v1941_v40 = vadd.f32 %v1895_v55, %v1685_v54  ;;  %v1852_v1 = vadd.f32 1.0, %v3028_v59  ;;  %v1699_v54 = vmax.f32 %v3725_v19, 0.0 }
 0x4be   : > { %v3032_v3 = vpop.eup %3031  ;;  %1976 = vst.msk [vmem:[%s3626_s20 + $0x98] sm:$0xff] %vm1956_vm2, %v1943_v61  ;;  %v1946_v11 = vadd.f32 %v1905_v9, %v1690_v13  ;;  %v1855_v12 = vadd.f32 1.0, %v3030_v0 }
 0x4bf   : > { %v3034_v14 = vpop.eup %3033  ;;  %1974 = vst.msk [vmem:[%s3626_s20 + $0x88] sm:$0xff] %vm1956_vm2, %v1941_v40  ;;  %v1901_v8 = vmul.f32 0.6931472, %v3032_v3  ;;  %3047 = vlog2.f32 %v1852_v1 }
 0x4c0   : > { %1979 = vst.msk [vmem:[%s3626_s20 + $0xb0] sm:$0xff] %vm1956_vm2, %v1946_v11  ;;  %3049 = vlog2.f32 %v1855_v12  ;;  %v1853_v22 = vadd.f32 1.0, %v3034_v14  ;;  %v3036_v16 = vpop.eup %3035 }
 0x4c1   : > { %v1944_v50 = vadd.f32 %v1901_v8, %v1688_v25  ;;  %3051 = vpow2.f32 %v1822_v56  ;;  %v3038_v17 = vpop.eup %3037  ;;  %v1907_v21 = vmul.f32 0.6931472, %v3036_v16 }
 0x4c2   : > { %3053 = vlog2.f32 %v1853_v22  ;;  %v3040_v20 = vpop.eup %3039  ;;  %v1903_v60 = vmul.f32 0.6931472, %v3038_v17 }
 0x4c3   : > { %1977 = vst.msk [vmem:[%s3626_s20 + $0xa0] sm:$0xff] %vm1956_vm2, %v1944_v50  ;;  %v3042_v62 = vpop.eup %3041  ;;  %v1947_v18 = vadd.f32 %v1907_v21, %v1691_v15  ;;  %v1858_v24 = vadd.f32 1.0, %v3040_v20 }
 0x4c4   : > { %v3044_v26 = vpop.eup %3043  ;;  %v1945_v27 = vadd.f32 %v1903_v60, %v1689_v52  ;;  %v1856_v28 = vadd.f32 1.0, %v3042_v62 }
 0x4c5   : > { %v3046_v30 = vpop.eup %3045  ;;  %1980 = vst.msk [vmem:[%s3626_s20 + $0xb8] sm:$0xff] %vm1956_vm2, %v1947_v18  ;;  %v1913_v29 = vmul.f32 0.6931472, %v3044_v26  ;;  %3055 = vlog2.f32 %v1858_v24 }
 0x4c6   : > { %1978 = vst.msk [vmem:[%s3626_s20 + $0xa8] sm:$0xff] %vm1956_vm2, %v1945_v27  ;;  %3057 = vlog2.f32 %v1856_v28  ;;  %v1859_v31 = vadd.f32 1.0, %v3046_v30 }
 0x4c7   : > { %v1950_v5 = vadd.f32 %v1913_v29, %v1694_v36 }
 0x4c8   : > { %3059 = vlog2.f32 %v1859_v31 }
 0x4c9   : > { %v3048_v33 = vpop.eup %3047  ;;  %1983 = vst.msk [vmem:[%s3626_s20 + $0xd0] sm:$0xff] %vm1956_vm2, %v1950_v5 }
 0x4ca   : > { %v3050_v35 = vpop.eup %3049  ;;  %v1909_v10 = vmul.f32 0.6931472, %v3048_v33 }
 0x4cb   : > { %v3052_v2 = vpop.eup %3051  ;;  %v1915_v41 = vmul.f32 0.6931472, %v3050_v35 }
 0x4cc   : > { %v3054_v42 = vpop.eup %3053  ;;  %v1948_v4 = vadd.f32 %v1909_v10, %v1692_v38  ;;  %v1857_v43 = vadd.f32 1.0, %v3052_v2 }
 0x4cd   : > { %v1951_v45 = vadd.f32 %v1915_v41, %v1695_v23  ;;  %v1911_v47 = vmul.f32 0.6931472, %v3054_v42 }
 0x4ce   : > { %1981 = vst.msk [vmem:[%s3626_s20 + $0xc0] sm:$0xff] %vm1956_vm2, %v1948_v4  ;;  %3061 = vlog2.f32 %v1857_v43 }
 0x4cf   : > { %1984 = vst.msk [vmem:[%s3626_s20 + $0xd8] sm:$0xff] %vm1956_vm2, %v1951_v45  ;;  %v1949_v6 = vadd.f32 %v1911_v47, %v1693_v46  ;;  %v3056_v48 = vpop.eup %3055 }
 0x4d0   : > { %v3058_v49 = vpop.eup %3057  ;;  %v1921_v51 = vmul.f32 0.6931472, %v3056_v48 }
 0x4d1   : > { %1982 = vst.msk [vmem:[%s3626_s20 + $0xc8] sm:$0xff] %vm1956_vm2, %v1949_v6  ;;  %v1917_v32 = vmul.f32 0.6931472, %v3058_v49 }
 0x4d2   : > { %v3060_v53 = vpop.eup %3059  ;;  %v1954_v63 = vadd.f32 %v1921_v51, %v1698_v39 }
 0x4d3   : > { %v1952_v58 = vadd.f32 %v1917_v32, %v1696_v7  ;;  %v1923_v55 = vmul.f32 0.6931472, %v3060_v53 }
 0x4d4   : > { %1987 = vst.msk [vmem:[%s3626_s20 + $0xf0] sm:$0xff] %vm1956_vm2, %v1954_v63 }
 0x4d5   : > { %1985 = vst.msk [vmem:[%s3626_s20 + $0xe0] sm:$0xff] %vm1956_vm2, %v1952_v58  ;;  %v1955_v13 = vadd.f32 %v1923_v55, %v1699_v54 }
 0x4d7   : > { %1988 = vst.msk [vmem:[%s3626_s20 + $0xf8] sm:$0xff] %vm1956_vm2, %v1955_v13  ;;  %1995 = sbr.rel (!%p3207_p4) target bundleno = 1302 (0x516), region = 44 }
 0x4d8   : > { %v3062_v59 = vpop.eup %3061 }
 0x4d9   : > { %v1919_v61 = vmul.f32 0.6931472, %v3062_v59 }
 0x4db   : > { %v1953_v9 = vadd.f32 %v1919_v61, %v1697_v34 }
 0x4dd   : > { %1986 = vst.msk [vmem:[%s3626_s20 + $0xe8] sm:$0xff] %vm1956_vm2, %v1953_v9 }
 0x4de   : > { %s3936_s13 = smov (!%p1998_p8, %s1997_s13), 32 }
 0x4df   : > { %s2423_s29 = sshll.u32 %s3936_s13, 7 }
 0x4e0   : > { %p2426_p9 = scmp.eq.s32.totalorder %s2423_s29, 0 }
 0x4e1   : > { %s3794_s30 = sshrl.u32 (!%p2426_p9), %s3936_s13, 5 }
 0x4e2   : > { %2006 = sbr.rel (%p2426_p9) target bundleno = 1302 (0x516), region = 48  ;;  %p2427_p10 = scmp.le.s32.totalorder (!%p2426_p9), %s3794_s30, 0 }
 0x4e9   : > { %2284 = sbr.rel (%p2427_p10) target bundleno = 1281 (0x501), region = 126  ;;  %s3927_s21 = smov (!%p2427_p10), %s3788_s28 }
 0x4ea   : > { %s3928_s26 = smov (!%p2427_p10), %s3626_s20  ;;  %s3803_s6 = smov (!%p2427_p10), 0  }
 0x4eb   : > { %s3805_s7 = smov (!%p2427_p10), 0  }
 0x4f0 LB: >> { %v2130_v57 = vld [vmem:[%s3126_s26] sm:$0xff]  ;;  %v2132_v19 = vld [vmem:[%s3126_s26 + $0x8] sm:$0xff]  ;;  %v2134_v44 = vld [vmem:[%s3126_s26 + $0x10] sm:$0xff]  ;;  %s2194_s8 = sadd.s32 1, %s3130_s6  ;;  %s2124_s7 = sadd.s32 1, %s3134_s7   ;;  %s3134_s7 = sphi %s3805_s7, %s2124_s7   ;;  %s3130_s6 = sphi %s3803_s6, %s3931_s6   ;;  %s3126_s26 = sphi %s3928_s26, %s3930_s26   ;;  %s3122_s21 = sphi %s3927_s21, %s3929_s21  }
 0x4f1   : >> { %2131 = vst [vmem:[%s3122_s21] sm:$0xff] %v2130_v57  ;;  %2133 = vst [vmem:[%s3122_s21 + $0x8] sm:$0xff] %v2132_v19  ;;  %v2136_v37 = vld [vmem:[%s3126_s26 + $0x18] sm:$0xff]  ;;  %v2138_v0 = vld [vmem:[%s3126_s26 + $0x20] sm:$0xff]  ;;  %p2195_p11 = scmp.ge.s32.totalorder %s2194_s8, %s3794_s30  ;;  %p2123_p12 = scmp.ge.s32.totalorder %s2124_s7, %s3794_s30 }
 0x4f2   : >> { %2135 = vst [vmem:[%s3122_s21 + $0x10] sm:$0xff] %v2134_v44  ;;  %v2140_v40 = vld [vmem:[%s3126_s26 + $0x28] sm:$0xff]  ;;  %2137 = vst [vmem:[%s3122_s21 + $0x18] sm:$0xff] %v2136_v37  ;;  %v2142_v1 = vld [vmem:[%s3126_s26 + $0x30] sm:$0xff] }
 0x4f3   : >> { %2139 = vst [vmem:[%s3122_s21 + $0x20] sm:$0xff] %v2138_v0  ;;  %2141 = vst [vmem:[%s3122_s21 + $0x28] sm:$0xff] %v2140_v40  ;;  %v2144_v3 = vld [vmem:[%s3126_s26 + $0x38] sm:$0xff]  ;;  %v2146_v11 = vld [vmem:[%s3126_s26 + $0x40] sm:$0xff]  ;;  %s3938_s8 = smov (%p2195_p11, %s2194_s8), 0 }
 0x4f4   : >> { %2143 = vst [vmem:[%s3122_s21 + $0x30] sm:$0xff] %v2142_v1  ;;  %2145 = vst [vmem:[%s3122_s21 + $0x38] sm:$0xff] %v2144_v3  ;;  %v2148_v12 = vld [vmem:[%s3126_s26 + $0x48] sm:$0xff]  ;;  %v2150_v56 = vld [vmem:[%s3126_s26 + $0x50] sm:$0xff]  ;;  %s2428_s9 = sshll.u32 %s3938_s8, 8  ;;  %s3931_s6 = smov %s3938_s8 }
 0x4f5   : >> { %2147 = vst [vmem:[%s3122_s21 + $0x40] sm:$0xff] %v2146_v11  ;;  %v2152_v14 = vld [vmem:[%s3126_s26 + $0x58] sm:$0xff]  ;;  %2149 = vst [vmem:[%s3122_s21 + $0x48] sm:$0xff] %v2148_v12  ;;  %v2154_v25 = vld [vmem:[%s3126_s26 + $0x60] sm:$0xff]  ;;  %s3861_s10 = scalar_lea.vmem %s3626_s20, %s2428_s9 [#allocation2]   ;;  %s2200_s11 = scalar_lea.vmem %s3788_s28, %s2428_s9  }
 0x4f6   : >> { %2151 = vst [vmem:[%s3122_s21 + $0x50] sm:$0xff] %v2150_v56  ;;  %2153 = vst [vmem:[%s3122_s21 + $0x58] sm:$0xff] %v2152_v14  ;;  %v2156_v8 = vld [vmem:[%s3126_s26 + $0x68] sm:$0xff]  ;;  %v2158_v22 = vld [vmem:[%s3126_s26 + $0x70] sm:$0xff] }
 0x4f7   : >> { %2155 = vst [vmem:[%s3122_s21 + $0x60] sm:$0xff] %v2154_v25  ;;  %2157 = vst [vmem:[%s3122_s21 + $0x68] sm:$0xff] %v2156_v8  ;;  %v2160_v16 = vld [vmem:[%s3126_s26 + $0x78] sm:$0xff]  ;;  %v2162_v50 = vld [vmem:[%s3126_s26 + $0x80] sm:$0xff] }
 0x4f8   : >> { %2159 = vst [vmem:[%s3122_s21 + $0x70] sm:$0xff] %v2158_v22  ;;  %v2164_v17 = vld [vmem:[%s3126_s26 + $0x88] sm:$0xff]  ;;  %2161 = vst [vmem:[%s3122_s21 + $0x78] sm:$0xff] %v2160_v16  ;;  %v2166_v15 = vld [vmem:[%s3126_s26 + $0x90] sm:$0xff] }
 0x4f9   : >> { %2163 = vst [vmem:[%s3122_s21 + $0x80] sm:$0xff] %v2162_v50  ;;  %2165 = vst [vmem:[%s3122_s21 + $0x88] sm:$0xff] %v2164_v17  ;;  %v2168_v21 = vld [vmem:[%s3126_s26 + $0x98] sm:$0xff]  ;;  %v2170_v20 = vld [vmem:[%s3126_s26 + $0xa0] sm:$0xff] }
 0x4fa   : >> { %2167 = vst [vmem:[%s3122_s21 + $0x90] sm:$0xff] %v2166_v15  ;;  %2169 = vst [vmem:[%s3122_s21 + $0x98] sm:$0xff] %v2168_v21  ;;  %v2172_v52 = vld [vmem:[%s3126_s26 + $0xa8] sm:$0xff]  ;;  %v2174_v60 = vld [vmem:[%s3126_s26 + $0xb0] sm:$0xff]  ;;  %2126 = sbr.rel (!%p2123_p12) target bundleno = 1264 (0x4f0), region = 132 }
 0x4fb   : >> { %2171 = vst [vmem:[%s3122_s21 + $0xa0] sm:$0xff] %v2170_v20  ;;  %v2176_v62 = vld [vmem:[%s3126_s26 + $0xb8] sm:$0xff]  ;;  %2173 = vst [vmem:[%s3122_s21 + $0xa8] sm:$0xff] %v2172_v52  ;;  %v2178_v18 = vld [vmem:[%s3126_s26 + $0xc0] sm:$0xff] }
 0x4fc   : >> { %2175 = vst [vmem:[%s3122_s21 + $0xb0] sm:$0xff] %v2174_v60  ;;  %2177 = vst [vmem:[%s3122_s21 + $0xb8] sm:$0xff] %v2176_v62  ;;  %v2180_v24 = vld [vmem:[%s3126_s26 + $0xc8] sm:$0xff]  ;;  %v2182_v26 = vld [vmem:[%s3126_s26 + $0xd0] sm:$0xff] }
 0x4fd   : >> { %2179 = vst [vmem:[%s3122_s21 + $0xc0] sm:$0xff] %v2178_v18  ;;  %2181 = vst [vmem:[%s3122_s21 + $0xc8] sm:$0xff] %v2180_v24  ;;  %v2184_v27 = vld [vmem:[%s3126_s26 + $0xd8] sm:$0xff]  ;;  %v2186_v28 = vld [vmem:[%s3126_s26 + $0xe0] sm:$0xff] }
 0x4fe   : >> { %2183 = vst [vmem:[%s3122_s21 + $0xd0] sm:$0xff] %v2182_v26  ;;  %v2188_v30 = vld [vmem:[%s3126_s26 + $0xe8] sm:$0xff]  ;;  %2185 = vst [vmem:[%s3122_s21 + $0xd8] sm:$0xff] %v2184_v27  ;;  %v2190_v36 = vld [vmem:[%s3126_s26 + $0xf0] sm:$0xff] }
 0x4ff   : >> { %2187 = vst [vmem:[%s3122_s21 + $0xe0] sm:$0xff] %v2186_v28  ;;  %2189 = vst [vmem:[%s3122_s21 + $0xe8] sm:$0xff] %v2188_v30  ;;  %v2192_v29 = vld [vmem:[%s3126_s26 + $0xf8] sm:$0xff]  ;;  %s3930_s26 = smov %s3861_s10 }
 0x500   : >> { %2191 = vst [vmem:[%s3122_s21 + $0xf0] sm:$0xff] %v2190_v36  ;;  %2193 = vst [vmem:[%s3122_s21 + $0xf8] sm:$0xff] %v2192_v29  ;;  %s3929_s21 = smov %s2200_s11 }
 0x501 PF: > { %s3902_s12 = sand.u32 31, %s3936_s13   ;;  %s2439_s14 = sshll.u32 %s3794_s30, 8 }
 0x502   : > { %s2205_s15 = scalar_lea.vmem %s3626_s20, %s2439_s14 [#allocation2]   ;;  %s2207_s16 = scalar_lea.vmem %s3788_s28, %s2439_s14  }
 0x503   : > { %p2433_p13 = scmp.le.s32.totalorder %s3902_s12, 0 }
 0x504   : > { %s3136_s17 = smov (!%p2433_p13), %s2207_s16   ;;  %s3140_s18 = smov (!%p2433_p13), %s2205_s15  }
 0x505   : > { %2298 = sbr.rel (%p2433_p13) target bundleno = 1302 (0x516), region = 137  ;;  %s3144_s23 = smov (!%p2433_p13), 0  }
 0x506   : > { %s3148_s24 = smov (!%p2433_p13), 0  }
 0x50c LB: >> { %v2217_v31 = vld [vmem:[%s3142_s18] sm:$0xff]  ;;  %s2219_s13 = sadd.s32 1, %s3146_s23  ;;  %s2211_s24 = sadd.s32 1, %s3150_s24   ;;  %s3150_s24 = sphi %s3148_s24, %s2211_s24   ;;  %s3146_s23 = sphi %s3144_s23, %s3145_s23   ;;  %s3142_s18 = sphi %s3140_s18, %s2224_s18   ;;  %s3138_s17 = sphi %s3136_s17, %s2225_s17  }
 0x50d   : >> { %2218 = vst [vmem:[%s3138_s17] sm:$0xff] %v2217_v31  ;;  %p2220_p0 = scmp.ge.s32.totalorder %s2219_s13, %s3902_s12  ;;  %p2210_p1 = scmp.ge.s32.totalorder %s2211_s24, %s3902_s12 }
 0x50f   : >> { %s3940_s13 = smov (%p2220_p0, %s2219_s13), 0  ;;  %2213 = sbr.rel (!%p2210_p1) target bundleno = 1292 (0x50c), region = 143 }
 0x510   : >> { %s2434_s20 = sshll.u32 %s3940_s13, 3  ;;  %s3145_s23 = smov %s3940_s13  }
 0x511   : >> { %s2224_s18 = scalar_lea.vmem %s2205_s15, %s2434_s20 [#allocation2]   ;;  %s2225_s17 = scalar_lea.vmem %s2207_s16, %s2434_s20  }
 0x516 PF: > { %p12_p2 = scmp.ge.s32.totalorder %s3197_s22, 6   ;;  %s3932_s18 = smov %s3114_s19 }
 0x517   : > { %s3933_s19 = smov %s3205_s25  ;;  %s3934_s20 = smov %s3197_s22 }
 0x518   :  { %14 = sbr.rel (!%p12_p2) target bundleno = 2 (0x2), region = 154 }

</bundles_post_ra>
